<compile_context>
chip_gen: v7x
topology: tpu7x:2x2x1
jax: 0.10.0
libtpu: 0.0.40
codegen_flags: <defaults>
</compile_context>

<pallas_src>
import functools

import jax
import jax.numpy as jnp
from jax import lax
from jax.experimental import pallas as pl
from jax.experimental.pallas import tpu as pltpu


# ----------------------------------------------------------------------------
# Pallas kernel: whole sequence resident in VMEM, time loop inside the kernel.
# ----------------------------------------------------------------------------
def _rnn_interp_kernel(
    x_ref,                        # (T, B, F)  fused [cat | val], F = nc + nm
    wx0_ref, bx0_ref,             # (F, H), (1, H)
    wg0_ref, bu0_ref,             # (2H, H), (1, H)   stacked [Uh0 ; Uz0]
    wx1_ref, bx1_ref,             # (H, H), (1, H)
    wg1_ref, bu1_ref,             # (2H, H), (1, H)   stacked [Uh1 ; Uz1]
    wh_ref, bh_ref,               # (H, F), (1, F)    fused head [Wc | Wv]
    out_ref,                      # (T-1, B, F)       fused [o_cat | o_val]
    *, nc,
):
    steps, B, F = out_ref.shape
    H = wx0_ref.shape[1]
    f32 = jnp.float32

    # Load weights / broadcast biases ONCE, before the time loop.
    wx0 = wx0_ref[...]
    wg0 = wg0_ref[...]
    wx1 = wx1_ref[...]
    wg1 = wg1_ref[...]
    wh = wh_ref[...]
    bx0 = jnp.broadcast_to(bx0_ref[...], (B, H))
    bu0 = jnp.broadcast_to(bu0_ref[...], (B, H))
    bx1 = jnp.broadcast_to(bx1_ref[...], (B, H))
    bu1 = jnp.broadcast_to(bu1_ref[...], (B, H))
    bh = jnp.broadcast_to(bh_ref[...], (B, F))

    def step(t, carry):
        h0, h1, prev = carry
        x_raw = x_ref[t]                                      # (B, F)
        # NaN imputation with the previous step's [o_cat | o_val].  `prev` is
        # initialized to x_ref[0], so at t == 0 this is the identity (NaNs at
        # t == 0 propagate, exactly as in the PyTorch reference).
        x_in = jnp.where(x_raw != x_raw, prev, x_raw)

        # --- MinimalRNN cell 0 (fused recurrent-gate matmul) ---
        z0 = jnp.tanh(jnp.dot(x_in, wx0, preferred_element_type=f32) + bx0)
        u0 = jax.nn.sigmoid(
            jnp.dot(jnp.concatenate([h0, z0], axis=-1), wg0,
                    preferred_element_type=f32) + bu0)
        h0n = u0 * h0 + (1.0 - u0) * z0

        # --- MinimalRNN cell 1 ---
        z1 = jnp.tanh(jnp.dot(h0n, wx1, preferred_element_type=f32) + bx1)
        u1 = jax.nn.sigmoid(
            jnp.dot(jnp.concatenate([h1, z1], axis=-1), wg1,
                    preferred_element_type=f32) + bu1)
        h1n = u1 * h1 + (1.0 - u1) * z1

        # --- fused output heads: one matmul for [logits | value deltas] ---
        head = jnp.dot(h1n, wh, preferred_element_type=f32) + bh
        logits = head[:, :nc]
        m = jnp.max(logits, axis=-1, keepdims=True)
        e = jnp.exp(logits - m)
        o_cat = e * pl.reciprocal(jnp.sum(e, axis=-1, keepdims=True), approx=True)
        o_val = head[:, nc:] + x_in[:, nc:]

        out = jnp.concatenate([o_cat, o_val], axis=-1)        # (B, F)
        out_ref[t] = out
        return h0n, h1n, out

    carry = (jnp.zeros((B, H), f32), jnp.zeros((B, H), f32), x_ref[0])
    if steps <= 32:
        # Short fixed trip count: trace-time unroll (full LLO visibility).
        for t in range(steps):
            carry = step(t, carry)
    else:
        lax.fori_loop(0, steps, step, carry)


# ----------------------------------------------------------------------------
# wrapper: fuse inputs / weights / outputs into lane-friendlier slabs.
# ----------------------------------------------------------------------------
@jax.jit
def rnn_model_interp_forward(cat_seq, val_seq, params):
    T, B, nc = cat_seq.shape
    nm = val_seq.shape[-1]
    F = nc + nm
    steps = T - 1                     # PyTorch loop: zip(range(T), range(1, T))
    f32 = jnp.float32

    # Fused [cat | val] sequence (the in-kernel concat vanishes).
    x_seq = jnp.concatenate([cat_seq, val_seq], axis=-1).astype(f32)

    # Host-side weight fusion.
    wg0 = jnp.concatenate([params["uh0"], params["uz0"]], axis=0).astype(f32)
    wg1 = jnp.concatenate([params["uh1"], params["uz1"]], axis=0).astype(f32)
    wh = jnp.concatenate([params["wc"], params["wv"]], axis=1).astype(f32)
    bh = jnp.concatenate([params["bc"], params["bv"]], axis=1).astype(f32)

    kernel = functools.partial(_rnn_interp_kernel, nc=nc)
    vmem_spec = pl.BlockSpec(memory_space=pltpu.MemorySpace.VMEM)

    out = pl.pallas_call(
        kernel,
        out_shape=jax.ShapeDtypeStruct((steps, B, F), f32),
        in_specs=[vmem_spec] * 11,
        out_specs=vmem_spec,
    )(
        x_seq,
        params["wx0"].astype(f32), params["bx0"].astype(f32), wg0, params["bu0"].astype(f32),
        params["wx1"].astype(f32), params["bx1"].astype(f32), wg1, params["bu1"].astype(f32),
        wh, bh,
    )

    return out[..., :nc], out[..., nc:]


# ----------------------------------------------------------------------------
# pure-JAX reference mirroring the PyTorch forward (sanity check)
# ----------------------------------------------------------------------------
def reference_forward(cat_seq, val_seq, params):
    T, B, nc = cat_seq.shape
    h = params["uh0"].shape[0]
    cat_seq = jnp.array(cat_seq)
    val_seq = jnp.array(val_seq)
    h0 = jnp.zeros((B, h), jnp.float32)
    h1 = jnp.zeros((B, h), jnp.float32)
    out_c, out_v = [], []

    def cell(x, hp, wx, bx, uh, uz, bu):
        z = jnp.tanh(x @ wx + bx)
        u = jax.nn.sigmoid(hp @ uh + z @ uz + bu)
        return u * hp + (1.0 - u) * z

    for i in range(T - 1):
        j = i + 1
        cat_i, val_i = cat_seq[i], val_seq[i]
        x = jnp.concatenate([cat_i, val_i], axis=-1)
        h0 = cell(x, h0, params["wx0"], params["bx0"], params["uh0"],
                  params["uz0"], params["bu0"])
        h1 = cell(h0, h1, params["wx1"], params["bx1"], params["uh1"],
                  params["uz1"], params["bu1"])
        logits = h1 @ params["wc"] + params["bc"]
        m = jnp.max(logits, axis=-1, keepdims=True)
        e = jnp.exp(logits - m)
        o_cat = e / jnp.sum(e, axis=-1, keepdims=True)
        o_val = h1 @ params["wv"] + params["bv"] + val_i
        out_c.append(o_cat)
        out_v.append(o_val)
        # NaN imputation of next step's inputs (EDL=False branch).
        val_seq = val_seq.at[j].set(
            jnp.where(jnp.isnan(val_seq[j]), o_val, val_seq[j]))
        cat_seq = cat_seq.at[j].set(
            jnp.where(jnp.isnan(cat_seq[j]), o_cat, cat_seq[j]))
    return jnp.stack(out_c), jnp.stack(out_v)


# ----------------------------------------------------------------------------
if __name__ == "__main__":
    T, B = 8, 8
    nb_classes, nb_measures, h_size = 4, 4, 32
    in0 = nb_classes + nb_measures

    key = jax.random.PRNGKey(0)
    keys = jax.random.split(key, 16)

    def w(k, shape, scale=0.2):
        return (scale * jax.random.normal(k, shape)).astype(jnp.float32)

    params = {
        "wx0": w(keys[0], (in0, h_size)),
        "bx0": jnp.zeros((1, h_size), jnp.float32),
        "uh0": w(keys[1], (h_size, h_size)),
        "uz0": w(keys[2], (h_size, h_size)),
        "bu0": jnp.zeros((1, h_size), jnp.float32),
        "wx1": w(keys[3], (h_size, h_size)),
        "bx1": jnp.zeros((1, h_size), jnp.float32),
        "uh1": w(keys[4], (h_size, h_size)),
        "uz1": w(keys[5], (h_size, h_size)),
        "bu1": jnp.zeros((1, h_size), jnp.float32),
        "wc": w(keys[6], (h_size, nb_classes)),
        "bc": w(keys[7], (1, nb_classes), 0.05),
        "wv": w(keys[8], (h_size, nb_measures)),
        "bv": w(keys[9], (1, nb_measures), 0.05),
    }

    cat_seq = jax.random.normal(keys[10], (T, B, nb_classes)).astype(jnp.float32)
    val_seq = jax.random.normal(keys[11], (T, B, nb_measures)).astype(jnp.float32)

    # Inject NaNs (missing observations) for t >= 1; t = 0 is fully observed.
    cat_miss = jax.random.bernoulli(keys[12], 0.3, (T, B, nb_classes))
    val_miss = jax.random.bernoulli(keys[13], 0.3, (T, B, nb_measures))
    cat_miss = cat_miss.at[0].set(False)
    val_miss = val_miss.at[0].set(False)
    cat_seq = jnp.where(cat_miss, jnp.nan, cat_seq)
    val_seq = jnp.where(val_miss, jnp.nan, val_seq)

    out_cat, out_val = rnn_model_interp_forward(cat_seq, val_seq, params)
    jax.block_until_ready((out_cat, out_val))

    ref_cat, ref_val = reference_forward(cat_seq, val_seq, params)
    assert out_cat.shape == (T - 1, B, nb_classes)
    assert out_val.shape == (T - 1, B, nb_measures)
    assert bool(jnp.all(jnp.isfinite(out_cat))) and bool(jnp.all(jnp.isfinite(out_val)))
    assert bool(jnp.allclose(out_cat, ref_cat, atol=1e-2, rtol=1e-2))
    assert bool(jnp.allclose(out_val, ref_val, atol=1e-2, rtol=1e-2))

    print("KERNEL_OK")
</pallas_src>

<mosaic_0001>
module attributes {stable_mosaic.version = 11 : i64} {
  func.func @_rnn_interp_kernel(%arg0: memref<8x8x8xf32, #tpu.memory_space<vmem>>, %arg1: memref<8x32xf32, #tpu.memory_space<vmem>>, %arg2: memref<1x32xf32, #tpu.memory_space<vmem>>, %arg3: memref<64x32xf32, #tpu.memory_space<vmem>>, %arg4: memref<1x32xf32, #tpu.memory_space<vmem>>, %arg5: memref<32x32xf32, #tpu.memory_space<vmem>>, %arg6: memref<1x32xf32, #tpu.memory_space<vmem>>, %arg7: memref<64x32xf32, #tpu.memory_space<vmem>>, %arg8: memref<1x32xf32, #tpu.memory_space<vmem>>, %arg9: memref<32x8xf32, #tpu.memory_space<vmem>>, %arg10: memref<1x8xf32, #tpu.memory_space<vmem>>, %arg11: memref<7x8x8xf32, #tpu.memory_space<vmem>>) attributes {dimension_semantics = [], scalar_prefetch = 0 : i64, scratch_operands = 0 : i64, tpu.core_type = #tpu.core_type<tc>} {
    %c0 = arith.constant 0 : index
    %c0_0 = arith.constant 0 : index
    %0 = vector.load %arg1[%c0, %c0_0] : memref<8x32xf32, #tpu.memory_space<vmem>>, vector<8x32xf32>
    %c0_1 = arith.constant 0 : index
    %c0_2 = arith.constant 0 : index
    %1 = vector.load %arg3[%c0_1, %c0_2] : memref<64x32xf32, #tpu.memory_space<vmem>>, vector<64x32xf32>
    %c0_3 = arith.constant 0 : index
    %c0_4 = arith.constant 0 : index
    %2 = vector.load %arg5[%c0_3, %c0_4] : memref<32x32xf32, #tpu.memory_space<vmem>>, vector<32x32xf32>
    %c0_5 = arith.constant 0 : index
    %c0_6 = arith.constant 0 : index
    %3 = vector.load %arg7[%c0_5, %c0_6] : memref<64x32xf32, #tpu.memory_space<vmem>>, vector<64x32xf32>
    %c0_7 = arith.constant 0 : index
    %c0_8 = arith.constant 0 : index
    %4 = vector.load %arg9[%c0_7, %c0_8] : memref<32x8xf32, #tpu.memory_space<vmem>>, vector<32x8xf32>
    %c0_9 = arith.constant 0 : index
    %c0_10 = arith.constant 0 : index
    %5 = vector.load %arg2[%c0_9, %c0_10] : memref<1x32xf32, #tpu.memory_space<vmem>>, vector<1x32xf32>
    %6 = vector.shape_cast %5 : vector<1x32xf32> to vector<1x32xf32>
    %7 = vector.broadcast %6 : vector<1x32xf32> to vector<8x32xf32>
    %c0_11 = arith.constant 0 : index
    %c0_12 = arith.constant 0 : index
    %8 = vector.load %arg4[%c0_11, %c0_12] : memref<1x32xf32, #tpu.memory_space<vmem>>, vector<1x32xf32>
    %9 = vector.shape_cast %8 : vector<1x32xf32> to vector<1x32xf32>
    %10 = vector.broadcast %9 : vector<1x32xf32> to vector<8x32xf32>
    %c0_13 = arith.constant 0 : index
    %c0_14 = arith.constant 0 : index
    %11 = vector.load %arg6[%c0_13, %c0_14] : memref<1x32xf32, #tpu.memory_space<vmem>>, vector<1x32xf32>
    %12 = vector.shape_cast %11 : vector<1x32xf32> to vector<1x32xf32>
    %13 = vector.broadcast %12 : vector<1x32xf32> to vector<8x32xf32>
    %c0_15 = arith.constant 0 : index
    %c0_16 = arith.constant 0 : index
    %14 = vector.load %arg8[%c0_15, %c0_16] : memref<1x32xf32, #tpu.memory_space<vmem>>, vector<1x32xf32>
    %15 = vector.shape_cast %14 : vector<1x32xf32> to vector<1x32xf32>
    %16 = vector.broadcast %15 : vector<1x32xf32> to vector<8x32xf32>
    %c0_17 = arith.constant 0 : index
    %c0_18 = arith.constant 0 : index
    %17 = vector.load %arg10[%c0_17, %c0_18] : memref<1x8xf32, #tpu.memory_space<vmem>>, vector<1x8xf32>
    %18 = vector.shape_cast %17 : vector<1x8xf32> to vector<1x8xf32>
    %19 = vector.broadcast %18 : vector<1x8xf32> to vector<8x8xf32>
    %cst = arith.constant 0.000000e+00 : f32
    %20 = vector.broadcast %cst : f32 to vector<8x32xf32>
    %cst_19 = arith.constant 0.000000e+00 : f32
    %21 = vector.broadcast %cst_19 : f32 to vector<8x32xf32>
    %c0_20 = arith.constant 0 : index
    %c0_21 = arith.constant 0 : index
    %c0_22 = arith.constant 0 : index
    %22 = vector.load %arg0[%c0_20, %c0_21, %c0_22] : memref<8x8x8xf32, #tpu.memory_space<vmem>>, vector<1x8x8xf32>
    %23 = vector.shape_cast %22 : vector<1x8x8xf32> to vector<8x8xf32>
    %c0_23 = arith.constant 0 : index
    %c0_24 = arith.constant 0 : index
    %c0_25 = arith.constant 0 : index
    %24 = vector.load %arg0[%c0_23, %c0_24, %c0_25] : memref<8x8x8xf32, #tpu.memory_space<vmem>>, vector<1x8x8xf32>
    %25 = vector.shape_cast %24 : vector<1x8x8xf32> to vector<8x8xf32>
    %26 = arith.cmpf one, %25, %25 : vector<8x8xf32>
    %27 = arith.select %26, %23, %25 : vector<8x8xi1>, vector<8x8xf32>
    %cst_26 = arith.constant dense<0.000000e+00> : vector<8x32xf32>
    %28 = tpu.matmul %27, %0, %cst_26 {dimension_numbers = #tpu.dot_dimension_numbers<[1], [0], [0], [1], [0, 0, 1, 1], [], []>} : vector<8x8xf32>, vector<8x32xf32>, vector<8x32xf32> -> vector<8x32xf32>
    %29 = arith.addf %28, %7 : vector<8x32xf32>
    %30 = math.tanh %29 : vector<8x32xf32>
    %31 = tpu.concatenate %20, %30 in 1 : vector<8x32xf32>, vector<8x32xf32> -> vector<8x64xf32>
    %cst_27 = arith.constant dense<0.000000e+00> : vector<8x32xf32>
    %32 = tpu.matmul %31, %1, %cst_27 {dimension_numbers = #tpu.dot_dimension_numbers<[1], [0], [0], [1], [0, 0, 1, 1], [], []>} : vector<8x64xf32>, vector<64x32xf32>, vector<8x32xf32> -> vector<8x32xf32>
    %33 = arith.addf %32, %10 : vector<8x32xf32>
    %34 = arith.negf %33 : vector<8x32xf32>
    %35 = math.exp %34 : vector<8x32xf32>
    %cst_28 = arith.constant 1.000000e+00 : f32
    %36 = vector.broadcast %cst_28 : f32 to vector<8x32xf32>
    %37 = arith.addf %36, %35 : vector<8x32xf32>
    %38 = arith.divf %36, %37 : vector<8x32xf32>
    %39 = arith.mulf %38, %20 : vector<8x32xf32>
    %cst_29 = arith.constant 1.000000e+00 : f32
    %40 = vector.broadcast %cst_29 : f32 to vector<8x32xf32>
    %41 = arith.subf %40, %38 : vector<8x32xf32>
    %42 = arith.mulf %41, %30 : vector<8x32xf32>
    %43 = arith.addf %39, %42 : vector<8x32xf32>
    %cst_30 = arith.constant dense<0.000000e+00> : vector<8x32xf32>
    %44 = tpu.matmul %43, %2, %cst_30 {dimension_numbers = #tpu.dot_dimension_numbers<[1], [0], [0], [1], [0, 0, 1, 1], [], []>} : vector<8x32xf32>, vector<32x32xf32>, vector<8x32xf32> -> vector<8x32xf32>
    %45 = arith.addf %44, %13 : vector<8x32xf32>
    %46 = math.tanh %45 : vector<8x32xf32>
    %47 = tpu.concatenate %21, %46 in 1 : vector<8x32xf32>, vector<8x32xf32> -> vector<8x64xf32>
    %cst_31 = arith.constant dense<0.000000e+00> : vector<8x32xf32>
    %48 = tpu.matmul %47, %3, %cst_31 {dimension_numbers = #tpu.dot_dimension_numbers<[1], [0], [0], [1], [0, 0, 1, 1], [], []>} : vector<8x64xf32>, vector<64x32xf32>, vector<8x32xf32> -> vector<8x32xf32>
    %49 = arith.addf %48, %16 : vector<8x32xf32>
    %50 = arith.negf %49 : vector<8x32xf32>
    %51 = math.exp %50 : vector<8x32xf32>
    %cst_32 = arith.constant 1.000000e+00 : f32
    %52 = vector.broadcast %cst_32 : f32 to vector<8x32xf32>
    %53 = arith.addf %52, %51 : vector<8x32xf32>
    %54 = arith.divf %52, %53 : vector<8x32xf32>
    %55 = arith.mulf %54, %21 : vector<8x32xf32>
    %cst_33 = arith.constant 1.000000e+00 : f32
    %56 = vector.broadcast %cst_33 : f32 to vector<8x32xf32>
    %57 = arith.subf %56, %54 : vector<8x32xf32>
    %58 = arith.mulf %57, %46 : vector<8x32xf32>
    %59 = arith.addf %55, %58 : vector<8x32xf32>
    %cst_34 = arith.constant dense<0.000000e+00> : vector<8x8xf32>
    %60 = tpu.matmul %59, %4, %cst_34 {dimension_numbers = #tpu.dot_dimension_numbers<[1], [0], [0], [1], [0, 0, 1, 1], [], []>} : vector<8x32xf32>, vector<32x8xf32>, vector<8x8xf32> -> vector<8x8xf32>
    %61 = arith.addf %60, %19 : vector<8x8xf32>
    %62 = vector.extract_strided_slice %61 {offsets = [0, 0], sizes = [8, 4], strides = [1, 1]} : vector<8x8xf32> to vector<8x4xf32>
    %cst_35 = arith.constant dense<0xFF800000> : vector<8xf32>
    %63 = vector.multi_reduction <maximumf>, %62, %cst_35 [1] : vector<8x4xf32> to vector<8xf32>
    %64 = vector.shape_cast %63 : vector<8xf32> to vector<8x1xf32>
    %65 = vector.broadcast %64 : vector<8x1xf32> to vector<8x4xf32>
    %66 = arith.subf %62, %65 : vector<8x4xf32>
    %67 = math.exp %66 : vector<8x4xf32>
    %cst_36 = arith.constant dense<0.000000e+00> : vector<8xf32>
    %68 = vector.multi_reduction <add>, %67, %cst_36 [1] : vector<8x4xf32> to vector<8xf32>
    %69 = vector.shape_cast %68 : vector<8xf32> to vector<8x1xf32>
    %70 = tpu.reciprocal %69 {approx = true} : vector<8x1xf32> -> vector<8x1xf32>
    %71 = vector.broadcast %70 : vector<8x1xf32> to vector<8x4xf32>
    %72 = arith.mulf %67, %71 : vector<8x4xf32>
    %73 = vector.extract_strided_slice %61 {offsets = [0, 4], sizes = [8, 4], strides = [1, 1]} : vector<8x8xf32> to vector<8x4xf32>
    %74 = vector.extract_strided_slice %27 {offsets = [0, 4], sizes = [8, 4], strides = [1, 1]} : vector<8x8xf32> to vector<8x4xf32>
    %75 = arith.addf %73, %74 : vector<8x4xf32>
    %76 = tpu.concatenate %72, %75 in 1 : vector<8x4xf32>, vector<8x4xf32> -> vector<8x8xf32>
    %c0_37 = arith.constant 0 : index
    %c0_38 = arith.constant 0 : index
    %c0_39 = arith.constant 0 : index
    %77 = vector.load %arg11[%c0_37, %c0_38, %c0_39] : memref<7x8x8xf32, #tpu.memory_space<vmem>>, vector<1x8x8xf32>
    %78 = vector.shape_cast %77 : vector<1x8x8xf32> to vector<8x8xf32>
    %79 = vector.shape_cast %76 : vector<8x8xf32> to vector<1x8x8xf32>
    tpu.vector_store %arg11[%c0_37, %c0_38, %c0_39], %79 {strides = array<i32>} : memref<7x8x8xf32, #tpu.memory_space<vmem>>, vector<1x8x8xf32>,
    %c1 = arith.constant 1 : index
    %c0_40 = arith.constant 0 : index
    %c0_41 = arith.constant 0 : index
    %80 = vector.load %arg0[%c1, %c0_40, %c0_41] : memref<8x8x8xf32, #tpu.memory_space<vmem>>, vector<1x8x8xf32>
    %81 = vector.shape_cast %80 : vector<1x8x8xf32> to vector<8x8xf32>
    %82 = arith.cmpf one, %81, %81 : vector<8x8xf32>
    %83 = arith.select %82, %76, %81 : vector<8x8xi1>, vector<8x8xf32>
    %cst_42 = arith.constant dense<0.000000e+00> : vector<8x32xf32>
    %84 = tpu.matmul %83, %0, %cst_42 {dimension_numbers = #tpu.dot_dimension_numbers<[1], [0], [0], [1], [0, 0, 1, 1], [], []>} : vector<8x8xf32>, vector<8x32xf32>, vector<8x32xf32> -> vector<8x32xf32>
    %85 = arith.addf %84, %7 : vector<8x32xf32>
    %86 = math.tanh %85 : vector<8x32xf32>
    %87 = tpu.concatenate %43, %86 in 1 : vector<8x32xf32>, vector<8x32xf32> -> vector<8x64xf32>
    %cst_43 = arith.constant dense<0.000000e+00> : vector<8x32xf32>
    %88 = tpu.matmul %87, %1, %cst_43 {dimension_numbers = #tpu.dot_dimension_numbers<[1], [0], [0], [1], [0, 0, 1, 1], [], []>} : vector<8x64xf32>, vector<64x32xf32>, vector<8x32xf32> -> vector<8x32xf32>
    %89 = arith.addf %88, %10 : vector<8x32xf32>
    %90 = arith.negf %89 : vector<8x32xf32>
    %91 = math.exp %90 : vector<8x32xf32>
    %cst_44 = arith.constant 1.000000e+00 : f32
    %92 = vector.broadcast %cst_44 : f32 to vector<8x32xf32>
    %93 = arith.addf %92, %91 : vector<8x32xf32>
    %94 = arith.divf %92, %93 : vector<8x32xf32>
    %95 = arith.mulf %94, %43 : vector<8x32xf32>
    %cst_45 = arith.constant 1.000000e+00 : f32
    %96 = vector.broadcast %cst_45 : f32 to vector<8x32xf32>
    %97 = arith.subf %96, %94 : vector<8x32xf32>
    %98 = arith.mulf %97, %86 : vector<8x32xf32>
    %99 = arith.addf %95, %98 : vector<8x32xf32>
    %cst_46 = arith.constant dense<0.000000e+00> : vector<8x32xf32>
    %100 = tpu.matmul %99, %2, %cst_46 {dimension_numbers = #tpu.dot_dimension_numbers<[1], [0], [0], [1], [0, 0, 1, 1], [], []>} : vector<8x32xf32>, vector<32x32xf32>, vector<8x32xf32> -> vector<8x32xf32>
    %101 = arith.addf %100, %13 : vector<8x32xf32>
    %102 = math.tanh %101 : vector<8x32xf32>
    %103 = tpu.concatenate %59, %102 in 1 : vector<8x32xf32>, vector<8x32xf32> -> vector<8x64xf32>
    %cst_47 = arith.constant dense<0.000000e+00> : vector<8x32xf32>
    %104 = tpu.matmul %103, %3, %cst_47 {dimension_numbers = #tpu.dot_dimension_numbers<[1], [0], [0], [1], [0, 0, 1, 1], [], []>} : vector<8x64xf32>, vector<64x32xf32>, vector<8x32xf32> -> vector<8x32xf32>
    %105 = arith.addf %104, %16 : vector<8x32xf32>
    %106 = arith.negf %105 : vector<8x32xf32>
    %107 = math.exp %106 : vector<8x32xf32>
    %cst_48 = arith.constant 1.000000e+00 : f32
    %108 = vector.broadcast %cst_48 : f32 to vector<8x32xf32>
    %109 = arith.addf %108, %107 : vector<8x32xf32>
    %110 = arith.divf %108, %109 : vector<8x32xf32>
    %111 = arith.mulf %110, %59 : vector<8x32xf32>
    %cst_49 = arith.constant 1.000000e+00 : f32
    %112 = vector.broadcast %cst_49 : f32 to vector<8x32xf32>
    %113 = arith.subf %112, %110 : vector<8x32xf32>
    %114 = arith.mulf %113, %102 : vector<8x32xf32>
    %115 = arith.addf %111, %114 : vector<8x32xf32>
    %cst_50 = arith.constant dense<0.000000e+00> : vector<8x8xf32>
    %116 = tpu.matmul %115, %4, %cst_50 {dimension_numbers = #tpu.dot_dimension_numbers<[1], [0], [0], [1], [0, 0, 1, 1], [], []>} : vector<8x32xf32>, vector<32x8xf32>, vector<8x8xf32> -> vector<8x8xf32>
    %117 = arith.addf %116, %19 : vector<8x8xf32>
    %118 = vector.extract_strided_slice %117 {offsets = [0, 0], sizes = [8, 4], strides = [1, 1]} : vector<8x8xf32> to vector<8x4xf32>
    %cst_51 = arith.constant dense<0xFF800000> : vector<8xf32>
    %119 = vector.multi_reduction <maximumf>, %118, %cst_51 [1] : vector<8x4xf32> to vector<8xf32>
    %120 = vector.shape_cast %119 : vector<8xf32> to vector<8x1xf32>
    %121 = vector.broadcast %120 : vector<8x1xf32> to vector<8x4xf32>
    %122 = arith.subf %118, %121 : vector<8x4xf32>
    %123 = math.exp %122 : vector<8x4xf32>
    %cst_52 = arith.constant dense<0.000000e+00> : vector<8xf32>
    %124 = vector.multi_reduction <add>, %123, %cst_52 [1] : vector<8x4xf32> to vector<8xf32>
    %125 = vector.shape_cast %124 : vector<8xf32> to vector<8x1xf32>
    %126 = tpu.reciprocal %125 {approx = true} : vector<8x1xf32> -> vector<8x1xf32>
    %127 = vector.broadcast %126 : vector<8x1xf32> to vector<8x4xf32>
    %128 = arith.mulf %123, %127 : vector<8x4xf32>
    %129 = vector.extract_strided_slice %117 {offsets = [0, 4], sizes = [8, 4], strides = [1, 1]} : vector<8x8xf32> to vector<8x4xf32>
    %130 = vector.extract_strided_slice %83 {offsets = [0, 4], sizes = [8, 4], strides = [1, 1]} : vector<8x8xf32> to vector<8x4xf32>
    %131 = arith.addf %129, %130 : vector<8x4xf32>
    %132 = tpu.concatenate %128, %131 in 1 : vector<8x4xf32>, vector<8x4xf32> -> vector<8x8xf32>
    %c1_53 = arith.constant 1 : index
    %c0_54 = arith.constant 0 : index
    %c0_55 = arith.constant 0 : index
    %133 = vector.load %arg11[%c1_53, %c0_54, %c0_55] : memref<7x8x8xf32, #tpu.memory_space<vmem>>, vector<1x8x8xf32>
    %134 = vector.shape_cast %133 : vector<1x8x8xf32> to vector<8x8xf32>
    %135 = vector.shape_cast %132 : vector<8x8xf32> to vector<1x8x8xf32>
    tpu.vector_store %arg11[%c1_53, %c0_54, %c0_55], %135 {strides = array<i32>} : memref<7x8x8xf32, #tpu.memory_space<vmem>>, vector<1x8x8xf32>,
    %c2 = arith.constant 2 : index
    %c0_56 = arith.constant 0 : index
    %c0_57 = arith.constant 0 : index
    %136 = vector.load %arg0[%c2, %c0_56, %c0_57] : memref<8x8x8xf32, #tpu.memory_space<vmem>>, vector<1x8x8xf32>
    %137 = vector.shape_cast %136 : vector<1x8x8xf32> to vector<8x8xf32>
    %138 = arith.cmpf one, %137, %137 : vector<8x8xf32>
    %139 = arith.select %138, %132, %137 : vector<8x8xi1>, vector<8x8xf32>
    %cst_58 = arith.constant dense<0.000000e+00> : vector<8x32xf32>
    %140 = tpu.matmul %139, %0, %cst_58 {dimension_numbers = #tpu.dot_dimension_numbers<[1], [0], [0], [1], [0, 0, 1, 1], [], []>} : vector<8x8xf32>, vector<8x32xf32>, vector<8x32xf32> -> vector<8x32xf32>
    %141 = arith.addf %140, %7 : vector<8x32xf32>
    %142 = math.tanh %141 : vector<8x32xf32>
    %143 = tpu.concatenate %99, %142 in 1 : vector<8x32xf32>, vector<8x32xf32> -> vector<8x64xf32>
    %cst_59 = arith.constant dense<0.000000e+00> : vector<8x32xf32>
    %144 = tpu.matmul %143, %1, %cst_59 {dimension_numbers = #tpu.dot_dimension_numbers<[1], [0], [0], [1], [0, 0, 1, 1], [], []>} : vector<8x64xf32>, vector<64x32xf32>, vector<8x32xf32> -> vector<8x32xf32>
    %145 = arith.addf %144, %10 : vector<8x32xf32>
    %146 = arith.negf %145 : vector<8x32xf32>
    %147 = math.exp %146 : vector<8x32xf32>
    %cst_60 = arith.constant 1.000000e+00 : f32
    %148 = vector.broadcast %cst_60 : f32 to vector<8x32xf32>
    %149 = arith.addf %148, %147 : vector<8x32xf32>
    %150 = arith.divf %148, %149 : vector<8x32xf32>
    %151 = arith.mulf %150, %99 : vector<8x32xf32>
    %cst_61 = arith.constant 1.000000e+00 : f32
    %152 = vector.broadcast %cst_61 : f32 to vector<8x32xf32>
    %153 = arith.subf %152, %150 : vector<8x32xf32>
    %154 = arith.mulf %153, %142 : vector<8x32xf32>
    %155 = arith.addf %151, %154 : vector<8x32xf32>
    %cst_62 = arith.constant dense<0.000000e+00> : vector<8x32xf32>
    %156 = tpu.matmul %155, %2, %cst_62 {dimension_numbers = #tpu.dot_dimension_numbers<[1], [0], [0], [1], [0, 0, 1, 1], [], []>} : vector<8x32xf32>, vector<32x32xf32>, vector<8x32xf32> -> vector<8x32xf32>
    %157 = arith.addf %156, %13 : vector<8x32xf32>
    %158 = math.tanh %157 : vector<8x32xf32>
    %159 = tpu.concatenate %115, %158 in 1 : vector<8x32xf32>, vector<8x32xf32> -> vector<8x64xf32>
    %cst_63 = arith.constant dense<0.000000e+00> : vector<8x32xf32>
    %160 = tpu.matmul %159, %3, %cst_63 {dimension_numbers = #tpu.dot_dimension_numbers<[1], [0], [0], [1], [0, 0, 1, 1], [], []>} : vector<8x64xf32>, vector<64x32xf32>, vector<8x32xf32> -> vector<8x32xf32>
    %161 = arith.addf %160, %16 : vector<8x32xf32>
    %162 = arith.negf %161 : vector<8x32xf32>
    %163 = math.exp %162 : vector<8x32xf32>
    %cst_64 = arith.constant 1.000000e+00 : f32
    %164 = vector.broadcast %cst_64 : f32 to vector<8x32xf32>
    %165 = arith.addf %164, %163 : vector<8x32xf32>
    %166 = arith.divf %164, %165 : vector<8x32xf32>
    %167 = arith.mulf %166, %115 : vector<8x32xf32>
    %cst_65 = arith.constant 1.000000e+00 : f32
    %168 = vector.broadcast %cst_65 : f32 to vector<8x32xf32>
    %169 = arith.subf %168, %166 : vector<8x32xf32>
    %170 = arith.mulf %169, %158 : vector<8x32xf32>
    %171 = arith.addf %167, %170 : vector<8x32xf32>
    %cst_66 = arith.constant dense<0.000000e+00> : vector<8x8xf32>
    %172 = tpu.matmul %171, %4, %cst_66 {dimension_numbers = #tpu.dot_dimension_numbers<[1], [0], [0], [1], [0, 0, 1, 1], [], []>} : vector<8x32xf32>, vector<32x8xf32>, vector<8x8xf32> -> vector<8x8xf32>
    %173 = arith.addf %172, %19 : vector<8x8xf32>
    %174 = vector.extract_strided_slice %173 {offsets = [0, 0], sizes = [8, 4], strides = [1, 1]} : vector<8x8xf32> to vector<8x4xf32>
    %cst_67 = arith.constant dense<0xFF800000> : vector<8xf32>
    %175 = vector.multi_reduction <maximumf>, %174, %cst_67 [1] : vector<8x4xf32> to vector<8xf32>
    %176 = vector.shape_cast %175 : vector<8xf32> to vector<8x1xf32>
    %177 = vector.broadcast %176 : vector<8x1xf32> to vector<8x4xf32>
    %178 = arith.subf %174, %177 : vector<8x4xf32>
    %179 = math.exp %178 : vector<8x4xf32>
    %cst_68 = arith.constant dense<0.000000e+00> : vector<8xf32>
    %180 = vector.multi_reduction <add>, %179, %cst_68 [1] : vector<8x4xf32> to vector<8xf32>
    %181 = vector.shape_cast %180 : vector<8xf32> to vector<8x1xf32>
    %182 = tpu.reciprocal %181 {approx = true} : vector<8x1xf32> -> vector<8x1xf32>
    %183 = vector.broadcast %182 : vector<8x1xf32> to vector<8x4xf32>
    %184 = arith.mulf %179, %183 : vector<8x4xf32>
    %185 = vector.extract_strided_slice %173 {offsets = [0, 4], sizes = [8, 4], strides = [1, 1]} : vector<8x8xf32> to vector<8x4xf32>
    %186 = vector.extract_strided_slice %139 {offsets = [0, 4], sizes = [8, 4], strides = [1, 1]} : vector<8x8xf32> to vector<8x4xf32>
    %187 = arith.addf %185, %186 : vector<8x4xf32>
    %188 = tpu.concatenate %184, %187 in 1 : vector<8x4xf32>, vector<8x4xf32> -> vector<8x8xf32>
    %c2_69 = arith.constant 2 : index
    %c0_70 = arith.constant 0 : index
    %c0_71 = arith.constant 0 : index
    %189 = vector.load %arg11[%c2_69, %c0_70, %c0_71] : memref<7x8x8xf32, #tpu.memory_space<vmem>>, vector<1x8x8xf32>
    %190 = vector.shape_cast %189 : vector<1x8x8xf32> to vector<8x8xf32>
    %191 = vector.shape_cast %188 : vector<8x8xf32> to vector<1x8x8xf32>
    tpu.vector_store %arg11[%c2_69, %c0_70, %c0_71], %191 {strides = array<i32>} : memref<7x8x8xf32, #tpu.memory_space<vmem>>, vector<1x8x8xf32>,
    %c3 = arith.constant 3 : index
    %c0_72 = arith.constant 0 : index
    %c0_73 = arith.constant 0 : index
    %192 = vector.load %arg0[%c3, %c0_72, %c0_73] : memref<8x8x8xf32, #tpu.memory_space<vmem>>, vector<1x8x8xf32>
    %193 = vector.shape_cast %192 : vector<1x8x8xf32> to vector<8x8xf32>
    %194 = arith.cmpf one, %193, %193 : vector<8x8xf32>
    %195 = arith.select %194, %188, %193 : vector<8x8xi1>, vector<8x8xf32>
    %cst_74 = arith.constant dense<0.000000e+00> : vector<8x32xf32>
    %196 = tpu.matmul %195, %0, %cst_74 {dimension_numbers = #tpu.dot_dimension_numbers<[1], [0], [0], [1], [0, 0, 1, 1], [], []>} : vector<8x8xf32>, vector<8x32xf32>, vector<8x32xf32> -> vector<8x32xf32>
    %197 = arith.addf %196, %7 : vector<8x32xf32>
    %198 = math.tanh %197 : vector<8x32xf32>
    %199 = tpu.concatenate %155, %198 in 1 : vector<8x32xf32>, vector<8x32xf32> -> vector<8x64xf32>
    %cst_75 = arith.constant dense<0.000000e+00> : vector<8x32xf32>
    %200 = tpu.matmul %199, %1, %cst_75 {dimension_numbers = #tpu.dot_dimension_numbers<[1], [0], [0], [1], [0, 0, 1, 1], [], []>} : vector<8x64xf32>, vector<64x32xf32>, vector<8x32xf32> -> vector<8x32xf32>
    %201 = arith.addf %200, %10 : vector<8x32xf32>
    %202 = arith.negf %201 : vector<8x32xf32>
    %203 = math.exp %202 : vector<8x32xf32>
    %cst_76 = arith.constant 1.000000e+00 : f32
    %204 = vector.broadcast %cst_76 : f32 to vector<8x32xf32>
    %205 = arith.addf %204, %203 : vector<8x32xf32>
    %206 = arith.divf %204, %205 : vector<8x32xf32>
    %207 = arith.mulf %206, %155 : vector<8x32xf32>
    %cst_77 = arith.constant 1.000000e+00 : f32
    %208 = vector.broadcast %cst_77 : f32 to vector<8x32xf32>
    %209 = arith.subf %208, %206 : vector<8x32xf32>
    %210 = arith.mulf %209, %198 : vector<8x32xf32>
    %211 = arith.addf %207, %210 : vector<8x32xf32>
    %cst_78 = arith.constant dense<0.000000e+00> : vector<8x32xf32>
    %212 = tpu.matmul %211, %2, %cst_78 {dimension_numbers = #tpu.dot_dimension_numbers<[1], [0], [0], [1], [0, 0, 1, 1], [], []>} : vector<8x32xf32>, vector<32x32xf32>, vector<8x32xf32> -> vector<8x32xf32>
    %213 = arith.addf %212, %13 : vector<8x32xf32>
    %214 = math.tanh %213 : vector<8x32xf32>
    %215 = tpu.concatenate %171, %214 in 1 : vector<8x32xf32>, vector<8x32xf32> -> vector<8x64xf32>
    %cst_79 = arith.constant dense<0.000000e+00> : vector<8x32xf32>
    %216 = tpu.matmul %215, %3, %cst_79 {dimension_numbers = #tpu.dot_dimension_numbers<[1], [0], [0], [1], [0, 0, 1, 1], [], []>} : vector<8x64xf32>, vector<64x32xf32>, vector<8x32xf32> -> vector<8x32xf32>
    %217 = arith.addf %216, %16 : vector<8x32xf32>
    %218 = arith.negf %217 : vector<8x32xf32>
    %219 = math.exp %218 : vector<8x32xf32>
    %cst_80 = arith.constant 1.000000e+00 : f32
    %220 = vector.broadcast %cst_80 : f32 to vector<8x32xf32>
    %221 = arith.addf %220, %219 : vector<8x32xf32>
    %222 = arith.divf %220, %221 : vector<8x32xf32>
    %223 = arith.mulf %222, %171 : vector<8x32xf32>
    %cst_81 = arith.constant 1.000000e+00 : f32
    %224 = vector.broadcast %cst_81 : f32 to vector<8x32xf32>
    %225 = arith.subf %224, %222 : vector<8x32xf32>
    %226 = arith.mulf %225, %214 : vector<8x32xf32>
    %227 = arith.addf %223, %226 : vector<8x32xf32>
    %cst_82 = arith.constant dense<0.000000e+00> : vector<8x8xf32>
    %228 = tpu.matmul %227, %4, %cst_82 {dimension_numbers = #tpu.dot_dimension_numbers<[1], [0], [0], [1], [0, 0, 1, 1], [], []>} : vector<8x32xf32>, vector<32x8xf32>, vector<8x8xf32> -> vector<8x8xf32>
    %229 = arith.addf %228, %19 : vector<8x8xf32>
    %230 = vector.extract_strided_slice %229 {offsets = [0, 0], sizes = [8, 4], strides = [1, 1]} : vector<8x8xf32> to vector<8x4xf32>
    %cst_83 = arith.constant dense<0xFF800000> : vector<8xf32>
    %231 = vector.multi_reduction <maximumf>, %230, %cst_83 [1] : vector<8x4xf32> to vector<8xf32>
    %232 = vector.shape_cast %231 : vector<8xf32> to vector<8x1xf32>
    %233 = vector.broadcast %232 : vector<8x1xf32> to vector<8x4xf32>
    %234 = arith.subf %230, %233 : vector<8x4xf32>
    %235 = math.exp %234 : vector<8x4xf32>
    %cst_84 = arith.constant dense<0.000000e+00> : vector<8xf32>
    %236 = vector.multi_reduction <add>, %235, %cst_84 [1] : vector<8x4xf32> to vector<8xf32>
    %237 = vector.shape_cast %236 : vector<8xf32> to vector<8x1xf32>
    %238 = tpu.reciprocal %237 {approx = true} : vector<8x1xf32> -> vector<8x1xf32>
    %239 = vector.broadcast %238 : vector<8x1xf32> to vector<8x4xf32>
    %240 = arith.mulf %235, %239 : vector<8x4xf32>
    %241 = vector.extract_strided_slice %229 {offsets = [0, 4], sizes = [8, 4], strides = [1, 1]} : vector<8x8xf32> to vector<8x4xf32>
    %242 = vector.extract_strided_slice %195 {offsets = [0, 4], sizes = [8, 4], strides = [1, 1]} : vector<8x8xf32> to vector<8x4xf32>
    %243 = arith.addf %241, %242 : vector<8x4xf32>
    %244 = tpu.concatenate %240, %243 in 1 : vector<8x4xf32>, vector<8x4xf32> -> vector<8x8xf32>
    %c3_85 = arith.constant 3 : index
    %c0_86 = arith.constant 0 : index
    %c0_87 = arith.constant 0 : index
    %245 = vector.load %arg11[%c3_85, %c0_86, %c0_87] : memref<7x8x8xf32, #tpu.memory_space<vmem>>, vector<1x8x8xf32>
    %246 = vector.shape_cast %245 : vector<1x8x8xf32> to vector<8x8xf32>
    %247 = vector.shape_cast %244 : vector<8x8xf32> to vector<1x8x8xf32>
    tpu.vector_store %arg11[%c3_85, %c0_86, %c0_87], %247 {strides = array<i32>} : memref<7x8x8xf32, #tpu.memory_space<vmem>>, vector<1x8x8xf32>,
    %c4 = arith.constant 4 : index
    %c0_88 = arith.constant 0 : index
    %c0_89 = arith.constant 0 : index
    %248 = vector.load %arg0[%c4, %c0_88, %c0_89] : memref<8x8x8xf32, #tpu.memory_space<vmem>>, vector<1x8x8xf32>
    %249 = vector.shape_cast %248 : vector<1x8x8xf32> to vector<8x8xf32>
    %250 = arith.cmpf one, %249, %249 : vector<8x8xf32>
    %251 = arith.select %250, %244, %249 : vector<8x8xi1>, vector<8x8xf32>
    %cst_90 = arith.constant dense<0.000000e+00> : vector<8x32xf32>
    %252 = tpu.matmul %251, %0, %cst_90 {dimension_numbers = #tpu.dot_dimension_numbers<[1], [0], [0], [1], [0, 0, 1, 1], [], []>} : vector<8x8xf32>, vector<8x32xf32>, vector<8x32xf32> -> vector<8x32xf32>
    %253 = arith.addf %252, %7 : vector<8x32xf32>
    %254 = math.tanh %253 : vector<8x32xf32>
    %255 = tpu.concatenate %211, %254 in 1 : vector<8x32xf32>, vector<8x32xf32> -> vector<8x64xf32>
    %cst_91 = arith.constant dense<0.000000e+00> : vector<8x32xf32>
    %256 = tpu.matmul %255, %1, %cst_91 {dimension_numbers = #tpu.dot_dimension_numbers<[1], [0], [0], [1], [0, 0, 1, 1], [], []>} : vector<8x64xf32>, vector<64x32xf32>, vector<8x32xf32> -> vector<8x32xf32>
    %257 = arith.addf %256, %10 : vector<8x32xf32>
    %258 = arith.negf %257 : vector<8x32xf32>
    %259 = math.exp %258 : vector<8x32xf32>
    %cst_92 = arith.constant 1.000000e+00 : f32
    %260 = vector.broadcast %cst_92 : f32 to vector<8x32xf32>
    %261 = arith.addf %260, %259 : vector<8x32xf32>
    %262 = arith.divf %260, %261 : vector<8x32xf32>
    %263 = arith.mulf %262, %211 : vector<8x32xf32>
    %cst_93 = arith.constant 1.000000e+00 : f32
    %264 = vector.broadcast %cst_93 : f32 to vector<8x32xf32>
    %265 = arith.subf %264, %262 : vector<8x32xf32>
    %266 = arith.mulf %265, %254 : vector<8x32xf32>
    %267 = arith.addf %263, %266 : vector<8x32xf32>
    %cst_94 = arith.constant dense<0.000000e+00> : vector<8x32xf32>
    %268 = tpu.matmul %267, %2, %cst_94 {dimension_numbers = #tpu.dot_dimension_numbers<[1], [0], [0], [1], [0, 0, 1, 1], [], []>} : vector<8x32xf32>, vector<32x32xf32>, vector<8x32xf32> -> vector<8x32xf32>
    %269 = arith.addf %268, %13 : vector<8x32xf32>
    %270 = math.tanh %269 : vector<8x32xf32>
    %271 = tpu.concatenate %227, %270 in 1 : vector<8x32xf32>, vector<8x32xf32> -> vector<8x64xf32>
    %cst_95 = arith.constant dense<0.000000e+00> : vector<8x32xf32>
    %272 = tpu.matmul %271, %3, %cst_95 {dimension_numbers = #tpu.dot_dimension_numbers<[1], [0], [0], [1], [0, 0, 1, 1], [], []>} : vector<8x64xf32>, vector<64x32xf32>, vector<8x32xf32> -> vector<8x32xf32>
    %273 = arith.addf %272, %16 : vector<8x32xf32>
    %274 = arith.negf %273 : vector<8x32xf32>
    %275 = math.exp %274 : vector<8x32xf32>
    %cst_96 = arith.constant 1.000000e+00 : f32
    %276 = vector.broadcast %cst_96 : f32 to vector<8x32xf32>
    %277 = arith.addf %276, %275 : vector<8x32xf32>
    %278 = arith.divf %276, %277 : vector<8x32xf32>
    %279 = arith.mulf %278, %227 : vector<8x32xf32>
    %cst_97 = arith.constant 1.000000e+00 : f32
    %280 = vector.broadcast %cst_97 : f32 to vector<8x32xf32>
    %281 = arith.subf %280, %278 : vector<8x32xf32>
    %282 = arith.mulf %281, %270 : vector<8x32xf32>
    %283 = arith.addf %279, %282 : vector<8x32xf32>
    %cst_98 = arith.constant dense<0.000000e+00> : vector<8x8xf32>
    %284 = tpu.matmul %283, %4, %cst_98 {dimension_numbers = #tpu.dot_dimension_numbers<[1], [0], [0], [1], [0, 0, 1, 1], [], []>} : vector<8x32xf32>, vector<32x8xf32>, vector<8x8xf32> -> vector<8x8xf32>
    %285 = arith.addf %284, %19 : vector<8x8xf32>
    %286 = vector.extract_strided_slice %285 {offsets = [0, 0], sizes = [8, 4], strides = [1, 1]} : vector<8x8xf32> to vector<8x4xf32>
    %cst_99 = arith.constant dense<0xFF800000> : vector<8xf32>
    %287 = vector.multi_reduction <maximumf>, %286, %cst_99 [1] : vector<8x4xf32> to vector<8xf32>
    %288 = vector.shape_cast %287 : vector<8xf32> to vector<8x1xf32>
    %289 = vector.broadcast %288 : vector<8x1xf32> to vector<8x4xf32>
    %290 = arith.subf %286, %289 : vector<8x4xf32>
    %291 = math.exp %290 : vector<8x4xf32>
    %cst_100 = arith.constant dense<0.000000e+00> : vector<8xf32>
    %292 = vector.multi_reduction <add>, %291, %cst_100 [1] : vector<8x4xf32> to vector<8xf32>
    %293 = vector.shape_cast %292 : vector<8xf32> to vector<8x1xf32>
    %294 = tpu.reciprocal %293 {approx = true} : vector<8x1xf32> -> vector<8x1xf32>
    %295 = vector.broadcast %294 : vector<8x1xf32> to vector<8x4xf32>
    %296 = arith.mulf %291, %295 : vector<8x4xf32>
    %297 = vector.extract_strided_slice %285 {offsets = [0, 4], sizes = [8, 4], strides = [1, 1]} : vector<8x8xf32> to vector<8x4xf32>
    %298 = vector.extract_strided_slice %251 {offsets = [0, 4], sizes = [8, 4], strides = [1, 1]} : vector<8x8xf32> to vector<8x4xf32>
    %299 = arith.addf %297, %298 : vector<8x4xf32>
    %300 = tpu.concatenate %296, %299 in 1 : vector<8x4xf32>, vector<8x4xf32> -> vector<8x8xf32>
    %c4_101 = arith.constant 4 : index
    %c0_102 = arith.constant 0 : index
    %c0_103 = arith.constant 0 : index
    %301 = vector.load %arg11[%c4_101, %c0_102, %c0_103] : memref<7x8x8xf32, #tpu.memory_space<vmem>>, vector<1x8x8xf32>
    %302 = vector.shape_cast %301 : vector<1x8x8xf32> to vector<8x8xf32>
    %303 = vector.shape_cast %300 : vector<8x8xf32> to vector<1x8x8xf32>
    tpu.vector_store %arg11[%c4_101, %c0_102, %c0_103], %303 {strides = array<i32>} : memref<7x8x8xf32, #tpu.memory_space<vmem>>, vector<1x8x8xf32>,
    %c5 = arith.constant 5 : index
    %c0_104 = arith.constant 0 : index
    %c0_105 = arith.constant 0 : index
    %304 = vector.load %arg0[%c5, %c0_104, %c0_105] : memref<8x8x8xf32, #tpu.memory_space<vmem>>, vector<1x8x8xf32>
    %305 = vector.shape_cast %304 : vector<1x8x8xf32> to vector<8x8xf32>
    %306 = arith.cmpf one, %305, %305 : vector<8x8xf32>
    %307 = arith.select %306, %300, %305 : vector<8x8xi1>, vector<8x8xf32>
    %cst_106 = arith.constant dense<0.000000e+00> : vector<8x32xf32>
    %308 = tpu.matmul %307, %0, %cst_106 {dimension_numbers = #tpu.dot_dimension_numbers<[1], [0], [0], [1], [0, 0, 1, 1], [], []>} : vector<8x8xf32>, vector<8x32xf32>, vector<8x32xf32> -> vector<8x32xf32>
    %309 = arith.addf %308, %7 : vector<8x32xf32>
    %310 = math.tanh %309 : vector<8x32xf32>
    %311 = tpu.concatenate %267, %310 in 1 : vector<8x32xf32>, vector<8x32xf32> -> vector<8x64xf32>
    %cst_107 = arith.constant dense<0.000000e+00> : vector<8x32xf32>
    %312 = tpu.matmul %311, %1, %cst_107 {dimension_numbers = #tpu.dot_dimension_numbers<[1], [0], [0], [1], [0, 0, 1, 1], [], []>} : vector<8x64xf32>, vector<64x32xf32>, vector<8x32xf32> -> vector<8x32xf32>
    %313 = arith.addf %312, %10 : vector<8x32xf32>
    %314 = arith.negf %313 : vector<8x32xf32>
    %315 = math.exp %314 : vector<8x32xf32>
    %cst_108 = arith.constant 1.000000e+00 : f32
    %316 = vector.broadcast %cst_108 : f32 to vector<8x32xf32>
    %317 = arith.addf %316, %315 : vector<8x32xf32>
    %318 = arith.divf %316, %317 : vector<8x32xf32>
    %319 = arith.mulf %318, %267 : vector<8x32xf32>
    %cst_109 = arith.constant 1.000000e+00 : f32
    %320 = vector.broadcast %cst_109 : f32 to vector<8x32xf32>
    %321 = arith.subf %320, %318 : vector<8x32xf32>
    %322 = arith.mulf %321, %310 : vector<8x32xf32>
    %323 = arith.addf %319, %322 : vector<8x32xf32>
    %cst_110 = arith.constant dense<0.000000e+00> : vector<8x32xf32>
    %324 = tpu.matmul %323, %2, %cst_110 {dimension_numbers = #tpu.dot_dimension_numbers<[1], [0], [0], [1], [0, 0, 1, 1], [], []>} : vector<8x32xf32>, vector<32x32xf32>, vector<8x32xf32> -> vector<8x32xf32>
    %325 = arith.addf %324, %13 : vector<8x32xf32>
    %326 = math.tanh %325 : vector<8x32xf32>
    %327 = tpu.concatenate %283, %326 in 1 : vector<8x32xf32>, vector<8x32xf32> -> vector<8x64xf32>
    %cst_111 = arith.constant dense<0.000000e+00> : vector<8x32xf32>
    %328 = tpu.matmul %327, %3, %cst_111 {dimension_numbers = #tpu.dot_dimension_numbers<[1], [0], [0], [1], [0, 0, 1, 1], [], []>} : vector<8x64xf32>, vector<64x32xf32>, vector<8x32xf32> -> vector<8x32xf32>
    %329 = arith.addf %328, %16 : vector<8x32xf32>
    %330 = arith.negf %329 : vector<8x32xf32>
    %331 = math.exp %330 : vector<8x32xf32>
    %cst_112 = arith.constant 1.000000e+00 : f32
    %332 = vector.broadcast %cst_112 : f32 to vector<8x32xf32>
    %333 = arith.addf %332, %331 : vector<8x32xf32>
    %334 = arith.divf %332, %333 : vector<8x32xf32>
    %335 = arith.mulf %334, %283 : vector<8x32xf32>
    %cst_113 = arith.constant 1.000000e+00 : f32
    %336 = vector.broadcast %cst_113 : f32 to vector<8x32xf32>
    %337 = arith.subf %336, %334 : vector<8x32xf32>
    %338 = arith.mulf %337, %326 : vector<8x32xf32>
    %339 = arith.addf %335, %338 : vector<8x32xf32>
    %cst_114 = arith.constant dense<0.000000e+00> : vector<8x8xf32>
    %340 = tpu.matmul %339, %4, %cst_114 {dimension_numbers = #tpu.dot_dimension_numbers<[1], [0], [0], [1], [0, 0, 1, 1], [], []>} : vector<8x32xf32>, vector<32x8xf32>, vector<8x8xf32> -> vector<8x8xf32>
    %341 = arith.addf %340, %19 : vector<8x8xf32>
    %342 = vector.extract_strided_slice %341 {offsets = [0, 0], sizes = [8, 4], strides = [1, 1]} : vector<8x8xf32> to vector<8x4xf32>
    %cst_115 = arith.constant dense<0xFF800000> : vector<8xf32>
    %343 = vector.multi_reduction <maximumf>, %342, %cst_115 [1] : vector<8x4xf32> to vector<8xf32>
    %344 = vector.shape_cast %343 : vector<8xf32> to vector<8x1xf32>
    %345 = vector.broadcast %344 : vector<8x1xf32> to vector<8x4xf32>
    %346 = arith.subf %342, %345 : vector<8x4xf32>
    %347 = math.exp %346 : vector<8x4xf32>
    %cst_116 = arith.constant dense<0.000000e+00> : vector<8xf32>
    %348 = vector.multi_reduction <add>, %347, %cst_116 [1] : vector<8x4xf32> to vector<8xf32>
    %349 = vector.shape_cast %348 : vector<8xf32> to vector<8x1xf32>
    %350 = tpu.reciprocal %349 {approx = true} : vector<8x1xf32> -> vector<8x1xf32>
    %351 = vector.broadcast %350 : vector<8x1xf32> to vector<8x4xf32>
    %352 = arith.mulf %347, %351 : vector<8x4xf32>
    %353 = vector.extract_strided_slice %341 {offsets = [0, 4], sizes = [8, 4], strides = [1, 1]} : vector<8x8xf32> to vector<8x4xf32>
    %354 = vector.extract_strided_slice %307 {offsets = [0, 4], sizes = [8, 4], strides = [1, 1]} : vector<8x8xf32> to vector<8x4xf32>
    %355 = arith.addf %353, %354 : vector<8x4xf32>
    %356 = tpu.concatenate %352, %355 in 1 : vector<8x4xf32>, vector<8x4xf32> -> vector<8x8xf32>
    %c5_117 = arith.constant 5 : index
    %c0_118 = arith.constant 0 : index
    %c0_119 = arith.constant 0 : index
    %357 = vector.load %arg11[%c5_117, %c0_118, %c0_119] : memref<7x8x8xf32, #tpu.memory_space<vmem>>, vector<1x8x8xf32>
    %358 = vector.shape_cast %357 : vector<1x8x8xf32> to vector<8x8xf32>
    %359 = vector.shape_cast %356 : vector<8x8xf32> to vector<1x8x8xf32>
    tpu.vector_store %arg11[%c5_117, %c0_118, %c0_119], %359 {strides = array<i32>} : memref<7x8x8xf32, #tpu.memory_space<vmem>>, vector<1x8x8xf32>,
    %c6 = arith.constant 6 : index
    %c0_120 = arith.constant 0 : index
    %c0_121 = arith.constant 0 : index
    %360 = vector.load %arg0[%c6, %c0_120, %c0_121] : memref<8x8x8xf32, #tpu.memory_space<vmem>>, vector<1x8x8xf32>
    %361 = vector.shape_cast %360 : vector<1x8x8xf32> to vector<8x8xf32>
    %362 = arith.cmpf one, %361, %361 : vector<8x8xf32>
    %363 = arith.select %362, %356, %361 : vector<8x8xi1>, vector<8x8xf32>
    %cst_122 = arith.constant dense<0.000000e+00> : vector<8x32xf32>
    %364 = tpu.matmul %363, %0, %cst_122 {dimension_numbers = #tpu.dot_dimension_numbers<[1], [0], [0], [1], [0, 0, 1, 1], [], []>} : vector<8x8xf32>, vector<8x32xf32>, vector<8x32xf32> -> vector<8x32xf32>
    %365 = arith.addf %364, %7 : vector<8x32xf32>
    %366 = math.tanh %365 : vector<8x32xf32>
    %367 = tpu.concatenate %323, %366 in 1 : vector<8x32xf32>, vector<8x32xf32> -> vector<8x64xf32>
    %cst_123 = arith.constant dense<0.000000e+00> : vector<8x32xf32>
    %368 = tpu.matmul %367, %1, %cst_123 {dimension_numbers = #tpu.dot_dimension_numbers<[1], [0], [0], [1], [0, 0, 1, 1], [], []>} : vector<8x64xf32>, vector<64x32xf32>, vector<8x32xf32> -> vector<8x32xf32>
    %369 = arith.addf %368, %10 : vector<8x32xf32>
    %370 = arith.negf %369 : vector<8x32xf32>
    %371 = math.exp %370 : vector<8x32xf32>
    %cst_124 = arith.constant 1.000000e+00 : f32
    %372 = vector.broadcast %cst_124 : f32 to vector<8x32xf32>
    %373 = arith.addf %372, %371 : vector<8x32xf32>
    %374 = arith.divf %372, %373 : vector<8x32xf32>
    %375 = arith.mulf %374, %323 : vector<8x32xf32>
    %cst_125 = arith.constant 1.000000e+00 : f32
    %376 = vector.broadcast %cst_125 : f32 to vector<8x32xf32>
    %377 = arith.subf %376, %374 : vector<8x32xf32>
    %378 = arith.mulf %377, %366 : vector<8x32xf32>
    %379 = arith.addf %375, %378 : vector<8x32xf32>
    %cst_126 = arith.constant dense<0.000000e+00> : vector<8x32xf32>
    %380 = tpu.matmul %379, %2, %cst_126 {dimension_numbers = #tpu.dot_dimension_numbers<[1], [0], [0], [1], [0, 0, 1, 1], [], []>} : vector<8x32xf32>, vector<32x32xf32>, vector<8x32xf32> -> vector<8x32xf32>
    %381 = arith.addf %380, %13 : vector<8x32xf32>
    %382 = math.tanh %381 : vector<8x32xf32>
    %383 = tpu.concatenate %339, %382 in 1 : vector<8x32xf32>, vector<8x32xf32> -> vector<8x64xf32>
    %cst_127 = arith.constant dense<0.000000e+00> : vector<8x32xf32>
    %384 = tpu.matmul %383, %3, %cst_127 {dimension_numbers = #tpu.dot_dimension_numbers<[1], [0], [0], [1], [0, 0, 1, 1], [], []>} : vector<8x64xf32>, vector<64x32xf32>, vector<8x32xf32> -> vector<8x32xf32>
    %385 = arith.addf %384, %16 : vector<8x32xf32>
    %386 = arith.negf %385 : vector<8x32xf32>
    %387 = math.exp %386 : vector<8x32xf32>
    %cst_128 = arith.constant 1.000000e+00 : f32
    %388 = vector.broadcast %cst_128 : f32 to vector<8x32xf32>
    %389 = arith.addf %388, %387 : vector<8x32xf32>
    %390 = arith.divf %388, %389 : vector<8x32xf32>
    %391 = arith.mulf %390, %339 : vector<8x32xf32>
    %cst_129 = arith.constant 1.000000e+00 : f32
    %392 = vector.broadcast %cst_129 : f32 to vector<8x32xf32>
    %393 = arith.subf %392, %390 : vector<8x32xf32>
    %394 = arith.mulf %393, %382 : vector<8x32xf32>
    %395 = arith.addf %391, %394 : vector<8x32xf32>
    %cst_130 = arith.constant dense<0.000000e+00> : vector<8x8xf32>
    %396 = tpu.matmul %395, %4, %cst_130 {dimension_numbers = #tpu.dot_dimension_numbers<[1], [0], [0], [1], [0, 0, 1, 1], [], []>} : vector<8x32xf32>, vector<32x8xf32>, vector<8x8xf32> -> vector<8x8xf32>
    %397 = arith.addf %396, %19 : vector<8x8xf32>
    %398 = vector.extract_strided_slice %397 {offsets = [0, 0], sizes = [8, 4], strides = [1, 1]} : vector<8x8xf32> to vector<8x4xf32>
    %cst_131 = arith.constant dense<0xFF800000> : vector<8xf32>
    %399 = vector.multi_reduction <maximumf>, %398, %cst_131 [1] : vector<8x4xf32> to vector<8xf32>
    %400 = vector.shape_cast %399 : vector<8xf32> to vector<8x1xf32>
    %401 = vector.broadcast %400 : vector<8x1xf32> to vector<8x4xf32>
    %402 = arith.subf %398, %401 : vector<8x4xf32>
    %403 = math.exp %402 : vector<8x4xf32>
    %cst_132 = arith.constant dense<0.000000e+00> : vector<8xf32>
    %404 = vector.multi_reduction <add>, %403, %cst_132 [1] : vector<8x4xf32> to vector<8xf32>
    %405 = vector.shape_cast %404 : vector<8xf32> to vector<8x1xf32>
    %406 = tpu.reciprocal %405 {approx = true} : vector<8x1xf32> -> vector<8x1xf32>
    %407 = vector.broadcast %406 : vector<8x1xf32> to vector<8x4xf32>
    %408 = arith.mulf %403, %407 : vector<8x4xf32>
    %409 = vector.extract_strided_slice %397 {offsets = [0, 4], sizes = [8, 4], strides = [1, 1]} : vector<8x8xf32> to vector<8x4xf32>
    %410 = vector.extract_strided_slice %363 {offsets = [0, 4], sizes = [8, 4], strides = [1, 1]} : vector<8x8xf32> to vector<8x4xf32>
    %411 = arith.addf %409, %410 : vector<8x4xf32>
    %412 = tpu.concatenate %408, %411 in 1 : vector<8x4xf32>, vector<8x4xf32> -> vector<8x8xf32>
    %c6_133 = arith.constant 6 : index
    %c0_134 = arith.constant 0 : index
    %c0_135 = arith.constant 0 : index
    %413 = vector.load %arg11[%c6_133, %c0_134, %c0_135] : memref<7x8x8xf32, #tpu.memory_space<vmem>>, vector<1x8x8xf32>
    %414 = vector.shape_cast %413 : vector<1x8x8xf32> to vector<8x8xf32>
    %415 = vector.shape_cast %412 : vector<8x8xf32> to vector<1x8x8xf32>
    tpu.vector_store %arg11[%c6_133, %c0_134, %c0_135], %415 {strides = array<i32>} : memref<7x8x8xf32, #tpu.memory_space<vmem>>, vector<1x8x8xf32>,
    return
  }
}

</mosaic_0001>

<bundles_post_ra>
// kernel: rnn_model_interp_forward.1
= control target key start
LH: loop header
LB: loop body
LE: loop exit
PB: predicated region body
PF: predicated region fallthrough
CT: control target
= control target key end

     0   :  { %vm99_vm0 = vcmask 64512   ;;  %v4119_v0 = vmov 0.0   ;;  %vm4120_vm1 = vmmov 0   ;;  %v4121_v3 = vmov 0.0|0.0   ;;  %s4841_s1 = inlined_call_operand.vmem [shape: f32[8,32], index: 1, kind: input, shape index: {}]   ;;  %s4842_s0 = inlined_call_operand.vmem [shape: f32[8,8,8], index: 0, kind: input, shape index: {}]   ;;  %s4843_s3 = inlined_call_operand.vmem [shape: f32[64,32], index: 3, kind: input, shape index: {}]   ;;  %s4844_s2 = inlined_call_operand.vmem [shape: f32[1,32], index: 2, kind: input, shape index: {}]   ;;  %s4845_s5 = inlined_call_operand.vmem [shape: f32[32,32], index: 5, kind: input, shape index: {}]   ;;  %s4846_s4 = inlined_call_operand.vmem [shape: f32[1,32], index: 4, kind: input, shape index: {}]   ;;  %s4847_s7 = inlined_call_operand.vmem [shape: f32[64,32], index: 7, kind: input, shape index: {}]   ;;  %s4848_s6 = inlined_call_operand.vmem [shape: f32[1,32], index: 6, kind: input, shape index: {}]   ;;  %s4849_s9 = inlined_call_operand.vmem [shape: f32[32,8], index: 9, kind: input, shape index: {}]   ;;  %s4850_s8 = inlined_call_operand.vmem [shape: f32[1,32], index: 8, kind: input, shape index: {}]   ;;  %s4851_s10 = inlined_call_operand.vmem [shape: f32[1,8], index: 10, kind: input, shape index: {}]   ;;  %s4852_s11 = inlined_call_operand.vmem [shape: f32[7,8,8], index: 11, kind: output, shape index: {}]  }
   0x1   :  { %3290 = vmatprep.subr.mxu0 %v4119_v0  ;;  %v4187_v1 = vld [vmem:[%s4841_s1] sm:$0xff]  ;;  %3292 = vmatprep.mubr.msk.f32.mxu0 %vm4120_vm1, %v4119_v0  ;;  %v40_v5 = vld [vmem:[%s4843_s3 + $0x8] sm:$0xff]  ;;  %v41_v6 = vld [vmem:[%s4843_s3 + $0x10] sm:$0xff]  ;;  %vm178_vm2 = vcmask 261120   ;;  %vm180_vm3 = vcmask 523264   ;;  %vm499_vm4 = vcmask 31744  }
   0x2   :  { %v4194_v2 = vld [vmem:[%s4842_s0] sm:$0xff]  ;;  %3291 = vmatpush3.msra.mxu0 %v4187_v1  ;;  %3311 = vmatprep.mubr.msk.f32.mxu1 %vm4120_vm1, %v4119_v0  ;;  %v42_v8 = vld [vmem:[%s4843_s3 + $0x18] sm:$0xff]  ;;  %v44_v11 = vld [vmem:[%s4843_s3 + $0x28] sm:$0xff] }
   0x3   :  { %3293 = vmatmul.mubr.msk.f32.vlgmr.msra.gmra.mrb[0].mxu0 %vm99_vm0, %v4194_v2  ;;  %3745 = vmatprep.subr.bf16.mxu1 %v4121_v3  ;;  %v39_v4 = vld [vmem:[%s4843_s3] sm:$0xff]  ;;  %v4220_v9 = vpack.c.bf16 %v42_v8, %v41_v6  ;;  %v45_v13 = vld [vmem:[%s4843_s3 + $0x30] sm:$0xff]  ;;  %v46_v14 = vld [vmem:[%s4843_s3 + $0x38] sm:$0xff] }
   0x4   :  { %3322 = vmatprep.mubr.msk.f32.mxu0 %vm4120_vm1, %v4119_v0  ;;  %3757 = vmatprep.subr.bf16.mxu0 %v4121_v3  ;;  %v4214_v7 = vpack.c.bf16 %v40_v5, %v39_v4  ;;  %v43_v10 = vld [vmem:[%s4843_s3 + $0x20] sm:$0xff]  ;;  %v4240_v15 = vpack.c.bf16 %v46_v14, %v45_v13  ;;  %s4122_s3 = smov 32   ;;  %v48_v24 = vld [vmem:[%s4845_s5 + $0x8] sm:$0xff]  ;;  %v49_v26 = vld [vmem:[%s4845_s5 + $0x10] sm:$0xff] }
   0x5   :  { %v4230_v12 = vpack.c.bf16 %v44_v11, %v43_v10  ;;  %v4248_v16 = vld [vmem:[%s4844_s2] ss:$0 sm:$0xff]  ;;  %v50_v27 = vld [vmem:[%s4845_s5 + $0x18] sm:$0xff]  ;;  %v52_v42 = vld [vmem:[%s4847_s7 + $0x8] sm:$0xff] }
   0x6   :  { %3747 = vmatpush3.bf16.msra.mxu1 %v4214_v7  ;;  %v47_v23 = vld [vmem:[%s4845_s5] sm:$0xff]  ;;  %v4272_v28 = vpack.c.bf16 %v50_v27, %v49_v26  ;;  %v53_v43 = vld [vmem:[%s4847_s7 + $0x10] sm:$0xff]  ;;  %v54_v45 = vld [vmem:[%s4847_s7 + $0x18] sm:$0xff] }
   0x7   :  { %3748 = vmatprep.subr.bf16.mxu1 %v4121_v3  ;;  %v4262_v25 = vpack.c.bf16 %v48_v24, %v47_v23  ;;  %v4279_v29 = vld [vmem:[%s4846_s4] ss:$0 sm:$0xff]  ;;  %v4303_v46 = vpack.c.bf16 %v54_v45, %v53_v43  ;;  %v56_v48 = vld [vmem:[%s4847_s7 + $0x28] sm:$0xff]  ;;  %v57_v50 = vld [vmem:[%s4847_s7 + $0x30] sm:$0xff] }
   0x8   :  { %v51_v41 = vld [vmem:[%s4847_s7] sm:$0xff]  ;;  %v58_v51 = vld [vmem:[%s4847_s7 + $0x38] sm:$0xff]  ;;  %v60_v61 = vld [vmem:[%s4849_s9 + $0x8] sm:$0xff] }
   0x9   :  { %3759 = vmatpush3.bf16.msra.mxu0 %v4262_v25  ;;  %v4297_v44 = vpack.c.bf16 %v52_v42, %v51_v41  ;;  %v55_v47 = vld [vmem:[%s4847_s7 + $0x20] sm:$0xff]  ;;  %v4323_v52 = vpack.c.bf16 %v58_v51, %v57_v50  ;;  %v61_v63 = vld [vmem:[%s4849_s9 + $0x10] sm:$0xff]  ;;  %v62_v4 = vld [vmem:[%s4849_s9 + $0x18] sm:$0xff] }
   0xa   :  { %3750 = vmatpush3.bf16.msra.mxu1 %v4220_v9  ;;  %3760 = vmatprep.subr.bf16.mxu0 %v4121_v3  ;;  %v4313_v49 = vpack.c.bf16 %v56_v48, %v55_v47  ;;  %v4331_v53 = vld [vmem:[%s4848_s6] ss:$0 sm:$0xff]  ;;  %v4363_v5 = vpack.c.bf16 %v62_v4, %v61_v63 }
   0xb   :  { %3751 = vmatprep.subr.bf16.mxu1 %v4121_v3  ;;  %v59_v60 = vld [vmem:[%s4849_s9] sm:$0xff] }
   0xc   :  { %v4353_v62 = vpack.c.bf16 %v60_v61, %v59_v60  ;;  %v4370_v6 = vld [vmem:[%s4850_s8] ss:$0 sm:$0xff] }
   0xd   :  { %3762 = vmatpush3.bf16.msra.mxu0 %v4272_v28  ;;  %v4384_v23 = vld [vmem:[%s4851_s10] ss:$0 sm:$0xff] }
   0xe   :  { %3753 = vmatpush3.bf16.msra.mxu1 %v4230_v12  ;;  %3763 = vmatprep.subr.bf16.mxu0 %v4121_v3 }
   0xf   :  { %3754 = vmatprep.subr.bf16.mxu1 %v4121_v3 }
  0x12   :  { %3756 = vmatpush3.bf16.msra.mxu1 %v4240_v15 }
  0x13   :  { %3775 = vmatprep.subr.bf16.mxu1 %v4121_v3 }
  0xd6   :  { %v169_v17 = vpop.f32.mrb[0].mxu0 }
  0xd7   :  { %v170_v18 = vadd.f32 %v4248_v16, %v169_v17  ;;  %v3294_v19 = vpop.f32.mrb[1].mxu0 }
  0xd9   :  { %4001 = vtanh.f32 %v170_v18 }
  0xe3   :  { %v4002_v20 = vpop.eup %4001 }
  0xe4   :  { %175 = vrot.lane.b32.xlu0 %v4002_v20, %s4122_s3 }
 0x156   :  { %v176_v21 = vpop.permute.xlu0 %175 }
 0x157   :  { %v179_v22 = vsel %vm178_vm2, 0.0, %v176_v21 }
 0x158   :  { %3312 = vmatmul.mubr.msk.f32.vlgmr.msra.gmra.mrb[0].mxu1 %vm180_vm3, %v179_v22 }
 0x159   :  { %3352 = vmatprep.mubr.msk.f32.mxu1 %vm4120_vm1, %v4119_v0  ;;  %3777 = vmatpush3.bf16.msra.mxu1 %v4353_v62 }
 0x15a   :  { %3778 = vmatprep.subr.bf16.mxu1 %v4121_v3 }
 0x15d   :  { %3780 = vmatpush3.bf16.msra.mxu1 %v4363_v5 }
 0x15e   :  { %3355 = vmatprep.subr.mxu1 %v4119_v0 }
 0x22b   :  { %v250_v30 = vpop.f32.mrb[0].mxu1 }
 0x22c   :  { %v251_v31 = vadd.f32 %v4279_v29, %v250_v30  ;;  %v3313_v32 = vpop.f32.mrb[1].mxu1 }
 0x22e   :  { %v3021_v33 = vmul.f32 -1.442695, %v251_v31 }
 0x230   :  { %4003 = vpow2.f32 %v3021_v33 }
 0x23a   :  { %v4004_v34 = vpop.eup %4003 }
 0x23b   :  { %v257_v35 = vadd.f32 1.0, %v4004_v34 }
 0x23d   :  { %4005 = vrcp.f32 %v257_v35 }
 0x247   :  { %v4006_v36 = vpop.eup %4005 }
 0x248   :  { %v261_v37 = vsub.f32 1.0, %v4006_v36  ;;  %v260_v38 = vmul.f32 0.0, %v4006_v36 }
 0x24a   :  { %v262_v39 = vmul.f32 %v4002_v20, %v261_v37  ;;  %v3026_v37 = vld [vmem:[%s4842_s0 + $0x8] sm:$0xff] }
 0x24b   :  { %vm516_vm5 = vcmp.ne.f32.partialorder %v3026_v37, %v3026_v37 }
 0x24c   :  { %v4282_v40 = vadd.f32 %v262_v39, %v260_v38 }
 0x24e   :  { %3323 = vmatmul.mubr.msk.f32.vlgmr.msra.gmra.mrb[2].mxu0 %vm178_vm2, %v4282_v40 }
 0x24f   :  { %3341 = vmatprep.mubr.msk.f32.mxu0 %vm4120_vm1, %v4119_v0  ;;  %3765 = vmatpush3.bf16.msra.mxu0 %v4297_v44 }
 0x250   :  { %3766 = vmatprep.subr.bf16.mxu0 %v4121_v3 }
 0x253   :  { %3768 = vmatpush3.bf16.msra.mxu0 %v4303_v46 }
 0x254   :  { %3769 = vmatprep.subr.bf16.mxu0 %v4121_v3 }
 0x257   :  { %3771 = vmatpush3.bf16.msra.mxu0 %v4313_v49 }
 0x258   :  { %3772 = vmatprep.subr.bf16.mxu0 %v4121_v3 }
 0x25b   :  { %3774 = vmatpush3.bf16.msra.mxu0 %v4323_v52 }
 0x25c   :  { %3781 = vmatprep.subr.bf16.mxu0 %v4121_v3 }
 0x321   :  { %v333_v54 = vpop.f32.mrb[2].mxu0 }
 0x322   :  { %v334_v55 = vadd.f32 %v4331_v53, %v333_v54  ;;  %v3324_v56 = vpop.f32.mrb[3].mxu0 }
 0x324   :  { %4007 = vtanh.f32 %v334_v55 }
 0x32e   :  { %v4008_v57 = vpop.eup %4007 }
 0x32f   :  { %339 = vrot.lane.b32.xlu0 %v4008_v57, %s4122_s3 }
 0x3a1   :  { %v340_v58 = vpop.permute.xlu0 %339 }
 0x3a2   :  { %v342_v59 = vsel %vm178_vm2, 0.0, %v340_v58 }
 0x3a3   :  { %3342 = vmatmul.mubr.msk.f32.vlgmr.msra.gmra.mrb[4].mxu0 %vm180_vm3, %v342_v59 }
 0x3a4   :  { %3783 = vmatpush3.bf16.msra.mxu0 %v4214_v7  ;;  %3376 = vmatprep.mubr.msk.f32.mxu0 %vm4120_vm1, %v4119_v0 }
 0x3a5   :  { %3784 = vmatprep.subr.bf16.mxu0 %v4121_v3 }
 0x3a8   :  { %3786 = vmatpush3.bf16.msra.mxu0 %v4220_v9 }
 0x3a9   :  { %3787 = vmatprep.subr.bf16.mxu0 %v4121_v3 }
 0x3ac   :  { %3789 = vmatpush3.bf16.msra.mxu0 %v4230_v12 }
 0x3ad   :  { %3790 = vmatprep.subr.bf16.mxu0 %v4121_v3 }
 0x3b0   :  { %3792 = vmatpush3.bf16.msra.mxu0 %v4240_v15 }
 0x3b1   :  { %3811 = vmatprep.subr.bf16.mxu0 %v4121_v3 }
 0x476   :  { %v412_v8 = vpop.f32.mrb[4].mxu0 }
 0x477   :  { %v413_v10 = vadd.f32 %v4370_v6, %v412_v8  ;;  %v3343_v11 = vpop.f32.mrb[5].mxu0 }
 0x479   :  { %v3024_v13 = vmul.f32 -1.442695, %v413_v10 }
 0x47b   :  { %4009 = vpow2.f32 %v3024_v13 }
 0x485   :  { %v4010_v14 = vpop.eup %4009 }
 0x486   :  { %v419_v17 = vadd.f32 1.0, %v4010_v14 }
 0x488   :  { %4011 = vrcp.f32 %v419_v17 }
 0x492   :  { %v4012_v18 = vpop.eup %4011 }
 0x493   :  { %v423_v19 = vsub.f32 1.0, %v4012_v18  ;;  %v422_v20 = vmul.f32 0.0, %v4012_v18 }
 0x495   :  { %v424_v21 = vmul.f32 %v4008_v57, %v423_v19 }
 0x497   :  { %v4373_v22 = vadd.f32 %v424_v21, %v422_v20 }
 0x499   :  { %3353 = vmatmul.mubr.msk.f32.vlgmr.msra.gmra.mrb[2].mxu1 %vm178_vm2, %v4373_v22 }
 0x49a   :  { %3356 = vmatpush3.msra.mxu1 %v4187_v1  ;;  %3357 = vmatprep.mubr.msk.f32.mxu1 %vm4120_vm1, %v4119_v0 }
 0x49b   :  { %3793 = vmatprep.subr.bf16.mxu1 %v4121_v3 }
 0x56c   :  { %v495_v24 = vpop.f32.mrb[2].mxu1 }
 0x56d   :  { %v496_v26 = vadd.f32 %v4384_v23, %v495_v24  ;;  %v3354_v27 = vpop.f32.mrb[3].mxu1 }
 0x56f   :  { %v500_v30 = vsel %vm499_vm4, %v496_v26, -inf  ;;  %v511_v39 = vadd.f32 %v496_v26, %v4194_v2 }
 0x570   :  { %501 = vmax.xlane.f32.xlu1 %v500_v30 }
 0x5fd   :  { %v502_v31 = vpop.xlane.xlu1 %501 }
 0x5fe   :  { %v503_v32 = vsub.f32 %v496_v26, %v502_v31 }
 0x600   :  { %v504_v33 = vmul.f32 1.442695, %v503_v32 }
 0x602   :  { %4013 = vpow2.f32 %v504_v33 }
 0x60c   :  { %v4014_v34 = vpop.eup %4013 }
 0x60d   :  { %v506_v35 = vsel %vm499_vm4, %v4014_v34, 0.0 }
 0x60e   :  { %507 = vadd.xlane.f32.xlu1 %v506_v35 }
 0x69b   :  { %v508_v36 = vpop.xlane.xlu1 %507 }
 0x69c   :  { %4015 = vrcp.f32 %v508_v36 }
 0x6a6   :  { %v4016_v38 = vpop.eup %4015 }
 0x6a7   :  { %v510_v41 = vmul.f32 %v4016_v38, %v4014_v34 }
 0x6a9   :  { %v512_v42 = vsel %vm499_vm4, %v510_v41, %v511_v39 }
 0x6aa   :  { %513 = vst.msk [vmem:[%s4852_s11] sm:$0xff] %vm99_vm0, %v512_v42  ;;  %v4398_v43 = vsel %vm516_vm5, %v512_v42, %v3026_v37 }
 0x6ab   :  { %3358 = vmatmul.mubr.msk.f32.vlgmr.msra.gmra.mrb[4].mxu1 %vm99_vm0, %v4398_v43 }
 0x6ac   :  { %3795 = vmatpush3.bf16.msra.mxu1 %v4262_v25  ;;  %3387 = vmatprep.mubr.msk.f32.mxu1 %vm4120_vm1, %v4119_v0 }
 0x6ad   :  { %3796 = vmatprep.subr.bf16.mxu1 %v4121_v3 }
 0x6b0   :  { %3798 = vmatpush3.bf16.msra.mxu1 %v4272_v28 }
 0x6b1   :  { %3799 = vmatprep.subr.bf16.mxu1 %v4121_v3 }
 0x77e   :  { %v587_v2 = vpop.f32.mrb[4].mxu1 }
 0x77f   :  { %v588_v45 = vadd.f32 %v4248_v16, %v587_v2  ;;  %v3359_v47 = vpop.f32.mrb[5].mxu1 }
 0x781   :  { %4017 = vtanh.f32 %v588_v45  ;;  %v3035_v45 = vld [vmem:[%s4842_s0 + $0x10] sm:$0xff] }
 0x782   :  { %vm932_vm6 = vcmp.ne.f32.partialorder %v3035_v45, %v3035_v45 }
 0x78b   :  { %v4018_v48 = vpop.eup %4017 }
 0x78c   :  { %593 = vrot.lane.b32.xlu0 %v4018_v48, %s4122_s3 }
 0x7fe   :  { %v594_v50 = vpop.permute.xlu0 %593 }
 0x7ff   :  { %v596_v51 = vsel %vm178_vm2, %v4282_v40, %v594_v50 }
 0x800   :  { %3377 = vmatmul.mubr.msk.f32.vlgmr.msra.gmra.mrb[6].mxu0 %vm180_vm3, %v596_v51 }
 0x801   :  { %3813 = vmatpush3.bf16.msra.mxu0 %v4353_v62  ;;  %3417 = vmatprep.mubr.msk.f32.mxu0 %vm4120_vm1, %v4119_v0 }
 0x802   :  { %3814 = vmatprep.subr.bf16.mxu0 %v4121_v3 }
 0x805   :  { %3816 = vmatpush3.bf16.msra.mxu0 %v4363_v5 }
 0x806   :  { %3420 = vmatprep.subr.mxu0 %v4119_v0 }
 0x8d3   :  { %v666_v54 = vpop.f32.mrb[6].mxu0 }
 0x8d4   :  { %v667_v55 = vadd.f32 %v4279_v29, %v666_v54  ;;  %v3378_v56 = vpop.f32.mrb[7].mxu0 }
 0x8d6   :  { %v3029_v57 = vmul.f32 -1.442695, %v667_v55 }
 0x8d8   :  { %4019 = vpow2.f32 %v3029_v57 }
 0x8e2   :  { %v4020_v58 = vpop.eup %4019 }
 0x8e3   :  { %v673_v59 = vadd.f32 1.0, %v4020_v58 }
 0x8e5   :  { %4021 = vrcp.f32 %v673_v59 }
 0x8ef   :  { %v4022_v60 = vpop.eup %4021 }
 0x8f0   :  { %v677_v61 = vsub.f32 1.0, %v4022_v60  ;;  %v676_v63 = vmul.f32 %v4022_v60, %v4282_v40 }
 0x8f2   :  { %v678_v4 = vmul.f32 %v4018_v48, %v677_v61 }
 0x8f4   :  { %v4421_v8 = vadd.f32 %v678_v4, %v676_v63 }
 0x8f6   :  { %3388 = vmatmul.mubr.msk.f32.vlgmr.msra.gmra.mrb[6].mxu1 %vm178_vm2, %v4421_v8 }
 0x8f7   :  { %3801 = vmatpush3.bf16.msra.mxu1 %v4297_v44  ;;  %3406 = vmatprep.mubr.msk.f32.mxu1 %vm4120_vm1, %v4119_v0 }
 0x8f8   :  { %3802 = vmatprep.subr.bf16.mxu1 %v4121_v3 }
 0x8fb   :  { %3804 = vmatpush3.bf16.msra.mxu1 %v4303_v46 }
 0x8fc   :  { %3805 = vmatprep.subr.bf16.mxu1 %v4121_v3 }
 0x8ff   :  { %3807 = vmatpush3.bf16.msra.mxu1 %v4313_v49 }
 0x900   :  { %3808 = vmatprep.subr.bf16.mxu1 %v4121_v3 }
 0x903   :  { %3810 = vmatpush3.bf16.msra.mxu1 %v4323_v52 }
 0x904   :  { %3817 = vmatprep.subr.bf16.mxu1 %v4121_v3 }
 0x9c9   :  { %v749_v40 = vpop.f32.mrb[6].mxu1 }
 0x9ca   :  { %v750_v10 = vadd.f32 %v4331_v53, %v749_v40  ;;  %v3389_v11 = vpop.f32.mrb[7].mxu1 }
 0x9cc   :  { %4023 = vtanh.f32 %v750_v10 }
 0x9d6   :  { %v4024_v13 = vpop.eup %4023 }
 0x9d7   :  { %755 = vrot.lane.b32.xlu1 %v4024_v13, %s4122_s3 }
 0xa49   :  { %v756_v14 = vpop.permute.xlu1 %755 }
 0xa4a   :  { %v758_v17 = vsel %vm178_vm2, %v4373_v22, %v756_v14 }
 0xa4b   :  { %3407 = vmatmul.mubr.msk.f32.vlgmr.msra.gmra.mrb[8].mxu1 %vm180_vm3, %v758_v17 }
 0xa4c   :  { %3819 = vmatpush3.bf16.msra.mxu1 %v4214_v7  ;;  %3441 = vmatprep.mubr.msk.f32.mxu1 %vm4120_vm1, %v4119_v0 }
 0xa4d   :  { %3820 = vmatprep.subr.bf16.mxu1 %v4121_v3 }
 0xa50   :  { %3822 = vmatpush3.bf16.msra.mxu1 %v4220_v9 }
 0xa51   :  { %3823 = vmatprep.subr.bf16.mxu1 %v4121_v3 }
 0xa54   :  { %3825 = vmatpush3.bf16.msra.mxu1 %v4230_v12 }
 0xa55   :  { %3826 = vmatprep.subr.bf16.mxu1 %v4121_v3 }
 0xa58   :  { %3828 = vmatpush3.bf16.msra.mxu1 %v4240_v15 }
 0xa59   :  { %3847 = vmatprep.subr.bf16.mxu1 %v4121_v3 }
 0xb1e   :  { %v828_v18 = vpop.f32.mrb[8].mxu1 }
 0xb1f   :  { %v829_v19 = vadd.f32 %v4370_v6, %v828_v18  ;;  %v3408_v20 = vpop.f32.mrb[9].mxu1 }
 0xb21   :  { %v3032_v21 = vmul.f32 -1.442695, %v829_v19 }
 0xb23   :  { %4025 = vpow2.f32 %v3032_v21 }
 0xb2d   :  { %v4026_v24 = vpop.eup %4025 }
 0xb2e   :  { %v835_v26 = vadd.f32 1.0, %v4026_v24 }
 0xb30   :  { %4027 = vrcp.f32 %v835_v26 }
 0xb3a   :  { %v4028_v27 = vpop.eup %4027 }
 0xb3b   :  { %v839_v30 = vsub.f32 1.0, %v4028_v27  ;;  %v838_v31 = vmul.f32 %v4028_v27, %v4373_v22 }
 0xb3d   :  { %v840_v32 = vmul.f32 %v4024_v13, %v839_v30 }
 0xb3f   :  { %v4452_v33 = vadd.f32 %v840_v32, %v838_v31 }
 0xb41   :  { %3418 = vmatmul.mubr.msk.f32.vlgmr.msra.gmra.mrb[8].mxu0 %vm178_vm2, %v4452_v33 }
 0xb42   :  { %3421 = vmatpush3.msra.mxu0 %v4187_v1  ;;  %3422 = vmatprep.mubr.msk.f32.mxu0 %vm4120_vm1, %v4119_v0 }
 0xb43   :  { %3829 = vmatprep.subr.bf16.mxu0 %v4121_v3 }
 0xc14   :  { %v911_v34 = vpop.f32.mrb[8].mxu0 }
 0xc15   :  { %v912_v35 = vadd.f32 %v4384_v23, %v911_v34  ;;  %v3419_v36 = vpop.f32.mrb[9].mxu0 }
 0xc17   :  { %v915_v37 = vsel %vm499_vm4, %v912_v35, -inf  ;;  %v926_v48 = vadd.f32 %v912_v35, %v4398_v43 }
 0xc18   :  { %916 = vmax.xlane.f32.xlu0 %v915_v37 }
 0xca5   :  { %v917_v22 = vpop.xlane.xlu0 %916 }
 0xca6   :  { %v918_v38 = vsub.f32 %v912_v35, %v917_v22 }
 0xca8   :  { %v919_v39 = vmul.f32 1.442695, %v918_v38 }
 0xcaa   :  { %4029 = vpow2.f32 %v919_v39 }
 0xcb4   :  { %v4030_v41 = vpop.eup %4029 }
 0xcb5   :  { %v921_v42 = vsel %vm499_vm4, %v4030_v41, 0.0 }
 0xcb6   :  { %922 = vadd.xlane.f32.xlu1 %v921_v42 }
 0xd43   :  { %v923_v2 = vpop.xlane.xlu1 %922 }
 0xd44   :  { %4031 = vrcp.f32 %v923_v2 }
 0xd4e   :  { %v4032_v47 = vpop.eup %4031 }
 0xd4f   :  { %v925_v50 = vmul.f32 %v4032_v47, %v4030_v41 }
 0xd51   :  { %v927_v51 = vsel %vm499_vm4, %v925_v50, %v926_v48 }
 0xd52   :  { %3034 = vst.msk [vmem:[%s4852_s11 + $0x8] sm:$0xff] %vm99_vm0, %v927_v51  ;;  %v4472_v54 = vsel %vm932_vm6, %v927_v51, %v3035_v45 }
 0xd53   :  { %3423 = vmatmul.mubr.msk.f32.vlgmr.msra.gmra.mrb[10].mxu0 %vm99_vm0, %v4472_v54 }
 0xd54   :  { %3831 = vmatpush3.bf16.msra.mxu0 %v4262_v25  ;;  %3452 = vmatprep.mubr.msk.f32.mxu0 %vm4120_vm1, %v4119_v0 }
 0xd55   :  { %3832 = vmatprep.subr.bf16.mxu0 %v4121_v3 }
 0xd58   :  { %3834 = vmatpush3.bf16.msra.mxu0 %v4272_v28 }
 0xd59   :  { %3835 = vmatprep.subr.bf16.mxu0 %v4121_v3 }
 0xe26   :  { %v1003_v43 = vpop.f32.mrb[10].mxu0 }
 0xe27   :  { %v1004_v55 = vadd.f32 %v4248_v16, %v1003_v43  ;;  %v3424_v56 = vpop.f32.mrb[11].mxu0 }
 0xe29   :  { %4033 = vtanh.f32 %v1004_v55  ;;  %v3044_v55 = vld [vmem:[%s4842_s0 + $0x18] sm:$0xff] }
 0xe2a   :  { %vm1348_vm7 = vcmp.ne.f32.partialorder %v3044_v55, %v3044_v55 }
 0xe33   :  { %v4034_v57 = vpop.eup %4033 }
 0xe34   :  { %1009 = vrot.lane.b32.xlu0 %v4034_v57, %s4122_s3 }
 0xea6   :  { %v1010_v58 = vpop.permute.xlu0 %1009 }
 0xea7   :  { %v1012_v59 = vsel %vm178_vm2, %v4421_v8, %v1010_v58 }
 0xea8   :  { %3442 = vmatmul.mubr.msk.f32.vlgmr.msra.gmra.mrb[10].mxu1 %vm180_vm3, %v1012_v59 }
 0xea9   :  { %3849 = vmatpush3.bf16.msra.mxu1 %v4353_v62  ;;  %3482 = vmatprep.mubr.msk.f32.mxu1 %vm4120_vm1, %v4119_v0 }
 0xeaa   :  { %3850 = vmatprep.subr.bf16.mxu1 %v4121_v3 }
 0xead   :  { %3852 = vmatpush3.bf16.msra.mxu1 %v4363_v5 }
 0xeae   :  { %3485 = vmatprep.subr.mxu1 %v4119_v0 }
 0xf7b   :  { %v1082_v60 = vpop.f32.mrb[10].mxu1 }
 0xf7c   :  { %v1083_v61 = vadd.f32 %v4279_v29, %v1082_v60  ;;  %v3443_v63 = vpop.f32.mrb[11].mxu1 }
 0xf7e   :  { %v3038_v4 = vmul.f32 -1.442695, %v1083_v61 }
 0xf80   :  { %4035 = vpow2.f32 %v3038_v4 }
 0xf8a   :  { %v4036_v40 = vpop.eup %4035 }
 0xf8b   :  { %v1089_v10 = vadd.f32 1.0, %v4036_v40 }
 0xf8d   :  { %4037 = vrcp.f32 %v1089_v10 }
 0xf97   :  { %v4038_v11 = vpop.eup %4037 }
 0xf98   :  { %v1093_v13 = vsub.f32 1.0, %v4038_v11  ;;  %v1092_v14 = vmul.f32 %v4038_v11, %v4421_v8 }
 0xf9a   :  { %v1094_v17 = vmul.f32 %v4034_v57, %v1093_v13 }
 0xf9c   :  { %v4495_v18 = vadd.f32 %v1094_v17, %v1092_v14 }
 0xf9e   :  { %3453 = vmatmul.mubr.msk.f32.vlgmr.msra.gmra.mrb[12].mxu0 %vm178_vm2, %v4495_v18 }
 0xf9f   :  { %3837 = vmatpush3.bf16.msra.mxu0 %v4297_v44  ;;  %3471 = vmatprep.mubr.msk.f32.mxu0 %vm4120_vm1, %v4119_v0 }
 0xfa0   :  { %3838 = vmatprep.subr.bf16.mxu0 %v4121_v3 }
 0xfa3   :  { %3840 = vmatpush3.bf16.msra.mxu0 %v4303_v46 }
 0xfa4   :  { %3841 = vmatprep.subr.bf16.mxu0 %v4121_v3 }
 0xfa7   :  { %3843 = vmatpush3.bf16.msra.mxu0 %v4313_v49 }
 0xfa8   :  { %3844 = vmatprep.subr.bf16.mxu0 %v4121_v3 }
 0xfab   :  { %3846 = vmatpush3.bf16.msra.mxu0 %v4323_v52 }
 0xfac   :  { %3853 = vmatprep.subr.bf16.mxu0 %v4121_v3 }
0x1071   :  { %v1165_v8 = vpop.f32.mrb[12].mxu0 }
0x1072   :  { %v1166_v19 = vadd.f32 %v4331_v53, %v1165_v8  ;;  %v3454_v20 = vpop.f32.mrb[13].mxu0 }
0x1074   :  { %4039 = vtanh.f32 %v1166_v19 }
0x107e   :  { %v4040_v21 = vpop.eup %4039 }
0x107f   :  { %1171 = vrot.lane.b32.xlu1 %v4040_v21, %s4122_s3 }
0x10f1   :  { %v1172_v24 = vpop.permute.xlu1 %1171 }
0x10f2   :  { %v1174_v26 = vsel %vm178_vm2, %v4452_v33, %v1172_v24 }
0x10f3   :  { %3472 = vmatmul.mubr.msk.f32.vlgmr.msra.gmra.mrb[14].mxu0 %vm180_vm3, %v1174_v26 }
0x10f4   :  { %3855 = vmatpush3.bf16.msra.mxu0 %v4214_v7  ;;  %3506 = vmatprep.mubr.msk.f32.mxu0 %vm4120_vm1, %v4119_v0 }
0x10f5   :  { %3856 = vmatprep.subr.bf16.mxu0 %v4121_v3 }
0x10f8   :  { %3858 = vmatpush3.bf16.msra.mxu0 %v4220_v9 }
0x10f9   :  { %3859 = vmatprep.subr.bf16.mxu0 %v4121_v3 }
0x10fc   :  { %3861 = vmatpush3.bf16.msra.mxu0 %v4230_v12 }
0x10fd   :  { %3862 = vmatprep.subr.bf16.mxu0 %v4121_v3 }
0x1100   :  { %3864 = vmatpush3.bf16.msra.mxu0 %v4240_v15 }
0x1101   :  { %3883 = vmatprep.subr.bf16.mxu0 %v4121_v3 }
0x11c6   :  { %v1244_v27 = vpop.f32.mrb[14].mxu0 }
0x11c7   :  { %v1245_v30 = vadd.f32 %v4370_v6, %v1244_v27  ;;  %v3473_v31 = vpop.f32.mrb[15].mxu0 }
0x11c9   :  { %v3041_v32 = vmul.f32 -1.442695, %v1245_v30 }
0x11cb   :  { %4041 = vpow2.f32 %v3041_v32 }
0x11d5   :  { %v4042_v34 = vpop.eup %4041 }
0x11d6   :  { %v1251_v35 = vadd.f32 1.0, %v4042_v34 }
0x11d8   :  { %4043 = vrcp.f32 %v1251_v35 }
0x11e2   :  { %v4044_v36 = vpop.eup %4043 }
0x11e3   :  { %v1255_v37 = vsub.f32 1.0, %v4044_v36  ;;  %v1254_v22 = vmul.f32 %v4044_v36, %v4452_v33 }
0x11e5   :  { %v1256_v38 = vmul.f32 %v4040_v21, %v1255_v37 }
0x11e7   :  { %v4526_v39 = vadd.f32 %v1256_v38, %v1254_v22 }
0x11e9   :  { %3483 = vmatmul.mubr.msk.f32.vlgmr.msra.gmra.mrb[12].mxu1 %vm178_vm2, %v4526_v39 }
0x11ea   :  { %3486 = vmatpush3.msra.mxu1 %v4187_v1  ;;  %3487 = vmatprep.mubr.msk.f32.mxu1 %vm4120_vm1, %v4119_v0 }
0x11eb   :  { %3865 = vmatprep.subr.bf16.mxu1 %v4121_v3 }
0x12bc   :  { %v1327_v41 = vpop.f32.mrb[12].mxu1 }
0x12bd   :  { %v1328_v42 = vadd.f32 %v4384_v23, %v1327_v41  ;;  %v3484_v2 = vpop.f32.mrb[13].mxu1 }
0x12bf   :  { %v1331_v45 = vsel %vm499_vm4, %v1328_v42, -inf  ;;  %v1342_v57 = vadd.f32 %v1328_v42, %v4472_v54 }
0x12c0   :  { %1332 = vmax.xlane.f32.xlu0 %v1331_v45 }
0x134d   :  { %v1333_v33 = vpop.xlane.xlu0 %1332 }
0x134e   :  { %v1334_v47 = vsub.f32 %v1328_v42, %v1333_v33 }
0x1350   :  { %v1335_v48 = vmul.f32 1.442695, %v1334_v47 }
0x1352   :  { %4045 = vpow2.f32 %v1335_v48 }
0x135c   :  { %v4046_v50 = vpop.eup %4045 }
0x135d   :  { %v1337_v51 = vsel %vm499_vm4, %v4046_v50, 0.0 }
0x135e   :  { %1338 = vadd.xlane.f32.xlu1 %v1337_v51 }
0x13eb   :  { %v1339_v43 = vpop.xlane.xlu1 %1338 }
0x13ec   :  { %4047 = vrcp.f32 %v1339_v43 }
0x13f6   :  { %v4048_v56 = vpop.eup %4047 }
0x13f7   :  { %v1341_v58 = vmul.f32 %v4048_v56, %v4046_v50 }
0x13f9   :  { %v1343_v59 = vsel %vm499_vm4, %v1341_v58, %v1342_v57 }
0x13fa   :  { %3043 = vst.msk [vmem:[%s4852_s11 + $0x10] sm:$0xff] %vm99_vm0, %v1343_v59  ;;  %v4546_v60 = vsel %vm1348_vm7, %v1343_v59, %v3044_v55 }
0x13fb   :  { %3488 = vmatmul.mubr.msk.f32.vlgmr.msra.gmra.mrb[14].mxu1 %vm99_vm0, %v4546_v60 }
0x13fc   :  { %3867 = vmatpush3.bf16.msra.mxu1 %v4262_v25  ;;  %3517 = vmatprep.mubr.msk.f32.mxu1 %vm4120_vm1, %v4119_v0 }
0x13fd   :  { %3868 = vmatprep.subr.bf16.mxu1 %v4121_v3 }
0x1400   :  { %3870 = vmatpush3.bf16.msra.mxu1 %v4272_v28 }
0x1401   :  { %3871 = vmatprep.subr.bf16.mxu1 %v4121_v3 }
0x14ce   :  { %v1419_v54 = vpop.f32.mrb[14].mxu1 }
0x14cf   :  { %v1420_v61 = vadd.f32 %v4248_v16, %v1419_v54  ;;  %v3489_v63 = vpop.f32.mrb[15].mxu1  ;;  %v3053_v54 = vld [vmem:[%s4842_s0 + $0x20] sm:$0xff] }
0x14d0   :  { %vm1764_vm8 = vcmp.ne.f32.partialorder %v3053_v54, %v3053_v54 }
0x14d1   :  { %4049 = vtanh.f32 %v1420_v61 }
0x14db   :  { %v4050_v4 = vpop.eup %4049 }
0x14dc   :  { %1425 = vrot.lane.b32.xlu0 %v4050_v4, %s4122_s3 }
0x154e   :  { %v1426_v40 = vpop.permute.xlu0 %1425 }
0x154f   :  { %v1428_v10 = vsel %vm178_vm2, %v4495_v18, %v1426_v40 }
0x1550   :  { %3507 = vmatmul.mubr.msk.f32.vlgmr.msra.gmra.mrb[16].mxu0 %vm180_vm3, %v1428_v10 }
0x1551   :  { %3885 = vmatpush3.bf16.msra.mxu0 %v4353_v62  ;;  %3547 = vmatprep.mubr.msk.f32.mxu0 %vm4120_vm1, %v4119_v0 }
0x1552   :  { %3886 = vmatprep.subr.bf16.mxu0 %v4121_v3 }
0x1555   :  { %3888 = vmatpush3.bf16.msra.mxu0 %v4363_v5 }
0x1556   :  { %3550 = vmatprep.subr.mxu0 %v4119_v0 }
0x1623   :  { %v1498_v11 = vpop.f32.mrb[16].mxu0 }
0x1624   :  { %v1499_v13 = vadd.f32 %v4279_v29, %v1498_v11  ;;  %v3508_v14 = vpop.f32.mrb[17].mxu0 }
0x1626   :  { %v3047_v17 = vmul.f32 -1.442695, %v1499_v13 }
0x1628   :  { %4051 = vpow2.f32 %v3047_v17 }
0x1632   :  { %v4052_v8 = vpop.eup %4051 }
0x1633   :  { %v1505_v19 = vadd.f32 1.0, %v4052_v8 }
0x1635   :  { %4053 = vrcp.f32 %v1505_v19 }
0x163f   :  { %v4054_v20 = vpop.eup %4053 }
0x1640   :  { %v1509_v21 = vsub.f32 1.0, %v4054_v20  ;;  %v1508_v24 = vmul.f32 %v4054_v20, %v4495_v18 }
0x1642   :  { %v1510_v26 = vmul.f32 %v4050_v4, %v1509_v21 }
0x1644   :  { %v4569_v27 = vadd.f32 %v1510_v26, %v1508_v24 }
0x1646   :  { %3518 = vmatmul.mubr.msk.f32.vlgmr.msra.gmra.mrb[16].mxu1 %vm178_vm2, %v4569_v27 }
0x1647   :  { %3873 = vmatpush3.bf16.msra.mxu1 %v4297_v44  ;;  %3536 = vmatprep.mubr.msk.f32.mxu1 %vm4120_vm1, %v4119_v0 }
0x1648   :  { %3874 = vmatprep.subr.bf16.mxu1 %v4121_v3 }
0x164b   :  { %3876 = vmatpush3.bf16.msra.mxu1 %v4303_v46 }
0x164c   :  { %3877 = vmatprep.subr.bf16.mxu1 %v4121_v3 }
0x164f   :  { %3879 = vmatpush3.bf16.msra.mxu1 %v4313_v49 }
0x1650   :  { %3880 = vmatprep.subr.bf16.mxu1 %v4121_v3 }
0x1653   :  { %3882 = vmatpush3.bf16.msra.mxu1 %v4323_v52 }
0x1654   :  { %3889 = vmatprep.subr.bf16.mxu1 %v4121_v3 }
0x1719   :  { %v1581_v18 = vpop.f32.mrb[16].mxu1 }
0x171a   :  { %v1582_v30 = vadd.f32 %v4331_v53, %v1581_v18  ;;  %v3519_v31 = vpop.f32.mrb[17].mxu1 }
0x171c   :  { %4055 = vtanh.f32 %v1582_v30 }
0x1726   :  { %v4056_v32 = vpop.eup %4055 }
0x1727   :  { %1587 = vrot.lane.b32.xlu1 %v4056_v32, %s4122_s3 }
0x1799   :  { %v1588_v34 = vpop.permute.xlu1 %1587 }
0x179a   :  { %v1590_v35 = vsel %vm178_vm2, %v4526_v39, %v1588_v34 }
0x179b   :  { %3537 = vmatmul.mubr.msk.f32.vlgmr.msra.gmra.mrb[18].mxu1 %vm180_vm3, %v1590_v35 }
0x179c   :  { %3891 = vmatpush3.bf16.msra.mxu1 %v4214_v7  ;;  %3571 = vmatprep.mubr.msk.f32.mxu1 %vm4120_vm1, %v4119_v0 }
0x179d   :  { %3892 = vmatprep.subr.bf16.mxu1 %v4121_v3 }
0x17a0   :  { %3894 = vmatpush3.bf16.msra.mxu1 %v4220_v9 }
0x17a1   :  { %3895 = vmatprep.subr.bf16.mxu1 %v4121_v3 }
0x17a4   :  { %3897 = vmatpush3.bf16.msra.mxu1 %v4230_v12 }
0x17a5   :  { %3898 = vmatprep.subr.bf16.mxu1 %v4121_v3 }
0x17a8   :  { %3900 = vmatpush3.bf16.msra.mxu1 %v4240_v15 }
0x17a9   :  { %3919 = vmatprep.subr.bf16.mxu1 %v4121_v3 }
0x186e   :  { %v1660_v36 = vpop.f32.mrb[18].mxu1 }
0x186f   :  { %v1661_v37 = vadd.f32 %v4370_v6, %v1660_v36  ;;  %v3538_v22 = vpop.f32.mrb[19].mxu1 }
0x1871   :  { %v3050_v38 = vmul.f32 -1.442695, %v1661_v37 }
0x1873   :  { %4057 = vpow2.f32 %v3050_v38 }
0x187d   :  { %v4058_v41 = vpop.eup %4057 }
0x187e   :  { %v1667_v42 = vadd.f32 1.0, %v4058_v41 }
0x1880   :  { %4059 = vrcp.f32 %v1667_v42 }
0x188a   :  { %v4060_v2 = vpop.eup %4059 }
0x188b   :  { %v1671_v45 = vsub.f32 1.0, %v4060_v2  ;;  %v1670_v33 = vmul.f32 %v4060_v2, %v4526_v39 }
0x188d   :  { %v1672_v47 = vmul.f32 %v4056_v32, %v1671_v45 }
0x188f   :  { %v4600_v48 = vadd.f32 %v1672_v47, %v1670_v33 }
0x1891   :  { %3548 = vmatmul.mubr.msk.f32.vlgmr.msra.gmra.mrb[18].mxu0 %vm178_vm2, %v4600_v48 }
0x1892   :  { %3551 = vmatpush3.msra.mxu0 %v4187_v1  ;;  %3552 = vmatprep.mubr.msk.f32.mxu0 %vm4120_vm1, %v4119_v0 }
0x1893   :  { %3901 = vmatprep.subr.bf16.mxu0 %v4121_v3 }
0x1964   :  { %v1743_v50 = vpop.f32.mrb[18].mxu0 }
0x1965   :  { %v1744_v51 = vadd.f32 %v4384_v23, %v1743_v50  ;;  %v3549_v43 = vpop.f32.mrb[19].mxu0 }
0x1967   :  { %v1747_v55 = vsel %vm499_vm4, %v1744_v51, -inf  ;;  %v1758_v63 = vadd.f32 %v1744_v51, %v4546_v60 }
0x1968   :  { %1748 = vmax.xlane.f32.xlu0 %v1747_v55  ;;  %v4681_v55 = vld [vmem:[%s4841_s1] sm:$0xff] }
0x19f5   :  { %v1749_v39 = vpop.xlane.xlu0 %1748 }
0x19f6   :  { %v1750_v56 = vsub.f32 %v1744_v51, %v1749_v39 }
0x19f8   :  { %v1751_v57 = vmul.f32 1.442695, %v1750_v56 }
0x19fa   :  { %4061 = vpow2.f32 %v1751_v57 }
0x1a04   :  { %v4062_v58 = vpop.eup %4061 }
0x1a05   :  { %v1753_v59 = vsel %vm499_vm4, %v4062_v58, 0.0 }
0x1a06   :  { %1754 = vadd.xlane.f32.xlu1 %v1753_v59 }
0x1a93   :  { %v1755_v1 = vpop.xlane.xlu1 %1754 }
0x1a94   :  { %4063 = vrcp.f32 %v1755_v1 }
0x1a9e   :  { %v4064_v61 = vpop.eup %4063 }
0x1a9f   :  { %v1757_v4 = vmul.f32 %v4064_v61, %v4062_v58 }
0x1aa1   :  { %v1759_v40 = vsel %vm499_vm4, %v1757_v4, %v1758_v63  ;;  %v3062_v4 = vld [vmem:[%s4842_s0 + $0x28] sm:$0xff] }
0x1aa2   :  { %3052 = vst.msk [vmem:[%s4852_s11 + $0x18] sm:$0xff] %vm99_vm0, %v1759_v40  ;;  %v4620_v10 = vsel %vm1764_vm8, %v1759_v40, %v3053_v54  ;;  %vm2180_vm9 = vcmp.ne.f32.partialorder %v3062_v4, %v3062_v4 }
0x1aa3   :  { %3553 = vmatmul.mubr.msk.f32.vlgmr.msra.gmra.mrb[20].mxu0 %vm99_vm0, %v4620_v10 }
0x1aa4   :  { %3903 = vmatpush3.bf16.msra.mxu0 %v4262_v25  ;;  %3582 = vmatprep.mubr.msk.f32.mxu0 %vm4120_vm1, %v4119_v0 }
0x1aa5   :  { %3904 = vmatprep.subr.bf16.mxu0 %v4121_v3 }
0x1aa8   :  { %3906 = vmatpush3.bf16.msra.mxu0 %v4272_v28 }
0x1aa9   :  { %3907 = vmatprep.subr.bf16.mxu0 %v4121_v3 }
0x1b76   :  { %v1835_v60 = vpop.f32.mrb[20].mxu0 }
0x1b77   :  { %v1836_v11 = vadd.f32 %v4248_v16, %v1835_v60  ;;  %v3554_v13 = vpop.f32.mrb[21].mxu0 }
0x1b79   :  { %4065 = vtanh.f32 %v1836_v11 }
0x1b83   :  { %v4066_v14 = vpop.eup %4065 }
0x1b84   :  { %1841 = vrot.lane.b32.xlu0 %v4066_v14, %s4122_s3 }
0x1bf6   :  { %v1842_v17 = vpop.permute.xlu0 %1841 }
0x1bf7   :  { %v1844_v8 = vsel %vm178_vm2, %v4569_v27, %v1842_v17  ;;  %v4712_v17 = vld [vmem:[%s4844_s2] ss:$0 sm:$0xff] }
0x1bf8   :  { %3572 = vmatmul.mubr.msk.f32.vlgmr.msra.gmra.mrb[20].mxu1 %vm180_vm3, %v1844_v8 }
0x1bf9   :  { %3921 = vmatpush3.bf16.msra.mxu1 %v4353_v62  ;;  %3612 = vmatprep.mubr.msk.f32.mxu1 %vm4120_vm1, %v4119_v0 }
0x1bfa   :  { %3922 = vmatprep.subr.bf16.mxu1 %v4121_v3 }
0x1bfd   :  { %3924 = vmatpush3.bf16.msra.mxu1 %v4363_v5 }
0x1bfe   :  { %3615 = vmatprep.subr.mxu1 %v4119_v0 }
0x1ccb   :  { %v1914_v16 = vpop.f32.mrb[20].mxu1 }
0x1ccc   :  { %v1915_v19 = vadd.f32 %v4279_v29, %v1914_v16  ;;  %v3573_v20 = vpop.f32.mrb[21].mxu1 }
0x1cce   :  { %v3056_v21 = vmul.f32 -1.442695, %v1915_v19 }
0x1cd0   :  { %4067 = vpow2.f32 %v3056_v21 }
0x1cda   :  { %v4068_v24 = vpop.eup %4067 }
0x1cdb   :  { %v1921_v26 = vadd.f32 1.0, %v4068_v24 }
0x1cdd   :  { %4069 = vrcp.f32 %v1921_v26  ;;  %v4728_v26 = vld [vmem:[%s4846_s4] ss:$0 sm:$0xff] }
0x1ce7   :  { %v4070_v18 = vpop.eup %4069 }
0x1ce8   :  { %v1925_v30 = vsub.f32 1.0, %v4070_v18  ;;  %v1924_v31 = vmul.f32 %v4070_v18, %v4569_v27 }
0x1cea   :  { %v1926_v32 = vmul.f32 %v4066_v14, %v1925_v30 }
0x1cec   :  { %v4643_v34 = vadd.f32 %v1926_v32, %v1924_v31 }
0x1cee   :  { %3583 = vmatmul.mubr.msk.f32.vlgmr.msra.gmra.mrb[22].mxu0 %vm178_vm2, %v4643_v34 }
0x1cef   :  { %3909 = vmatpush3.bf16.msra.mxu0 %v4297_v44  ;;  %3601 = vmatprep.mubr.msk.f32.mxu0 %vm4120_vm1, %v4119_v0 }
0x1cf0   :  { %3910 = vmatprep.subr.bf16.mxu0 %v4121_v3 }
0x1cf3   :  { %3912 = vmatpush3.bf16.msra.mxu0 %v4303_v46 }
0x1cf4   :  { %3913 = vmatprep.subr.bf16.mxu0 %v4121_v3 }
0x1cf7   :  { %3915 = vmatpush3.bf16.msra.mxu0 %v4313_v49 }
0x1cf8   :  { %3916 = vmatprep.subr.bf16.mxu0 %v4121_v3 }
0x1cfb   :  { %3918 = vmatpush3.bf16.msra.mxu0 %v4323_v52 }
0x1cfc   :  { %3925 = vmatprep.subr.bf16.mxu0 %v4121_v3 }
0x1dc1   :  { %v1997_v29 = vpop.f32.mrb[22].mxu0 }
0x1dc2   :  { %v1998_v27 = vadd.f32 %v4331_v53, %v1997_v29  ;;  %v3584_v35 = vpop.f32.mrb[23].mxu0 }
0x1dc4   :  { %4071 = vtanh.f32 %v1998_v27 }
0x1dce   :  { %v4072_v36 = vpop.eup %4071 }
0x1dcf   :  { %2003 = vrot.lane.b32.xlu1 %v4072_v36, %s4122_s3 }
0x1e41   :  { %v2004_v37 = vpop.permute.xlu1 %2003 }
0x1e42   :  { %v2006_v22 = vsel %vm178_vm2, %v4600_v48, %v2004_v37 }
0x1e43   :  { %3602 = vmatmul.mubr.msk.f32.vlgmr.msra.gmra.mrb[24].mxu0 %vm180_vm3, %v2006_v22 }
0x1e44   :  { %3927 = vmatpush3.bf16.msra.mxu0 %v4214_v7  ;;  %3636 = vmatprep.mubr.msk.f32.mxu0 %vm4120_vm1, %v4119_v0 }
0x1e45   :  { %3928 = vmatprep.subr.bf16.mxu0 %v4121_v3 }
0x1e48   :  { %3930 = vmatpush3.bf16.msra.mxu0 %v4220_v9 }
0x1e49   :  { %3931 = vmatprep.subr.bf16.mxu0 %v4121_v3 }
0x1e4c   :  { %3933 = vmatpush3.bf16.msra.mxu0 %v4230_v12 }
0x1e4d   :  { %3934 = vmatprep.subr.bf16.mxu0 %v4121_v3 }
0x1e50   :  { %3936 = vmatpush3.bf16.msra.mxu0 %v4240_v15 }
0x1e51   :  { %3955 = vmatprep.subr.bf16.mxu0 %v4121_v3 }
0x1f16   :  { %v2076_v53 = vpop.f32.mrb[24].mxu0 }
0x1f17   :  { %v2077_v38 = vadd.f32 %v4370_v6, %v2076_v53  ;;  %v3603_v41 = vpop.f32.mrb[25].mxu0  ;;  %v4749_v53 = vld [vmem:[%s4848_s6] ss:$0 sm:$0xff] }
0x1f19   :  { %v3059_v42 = vmul.f32 -1.442695, %v2077_v38 }
0x1f1b   :  { %4073 = vpow2.f32 %v3059_v42 }
0x1f25   :  { %v4074_v2 = vpop.eup %4073 }
0x1f26   :  { %v2083_v45 = vadd.f32 1.0, %v4074_v2 }
0x1f28   :  { %4075 = vrcp.f32 %v2083_v45 }
0x1f32   :  { %v4076_v33 = vpop.eup %4075 }
0x1f33   :  { %v2087_v47 = vsub.f32 1.0, %v4076_v33  ;;  %v2086_v50 = vmul.f32 %v4076_v33, %v4600_v48 }
0x1f35   :  { %v2088_v51 = vmul.f32 %v4072_v36, %v2087_v47 }
0x1f37   :  { %v4674_v43 = vadd.f32 %v2088_v51, %v2086_v50 }
0x1f39   :  { %3613 = vmatmul.mubr.msk.f32.vlgmr.msra.gmra.mrb[22].mxu1 %vm178_vm2, %v4674_v43 }
0x1f3a   :  { %3616 = vmatpush3.msra.mxu1 %v4681_v55  ;;  %3617 = vmatprep.mubr.msk.f32.mxu1 %vm4120_vm1, %v4119_v0 }
0x1f3b   :  { %3937 = vmatprep.subr.bf16.mxu1 %v4121_v3 }
0x200c   :  { %v2159_v39 = vpop.f32.mrb[22].mxu1 }
0x200d   :  { %v2160_v48 = vadd.f32 %v4384_v23, %v2159_v39  ;;  %v3614_v56 = vpop.f32.mrb[23].mxu1 }
0x200f   :  { %v2163_v57 = vsel %vm499_vm4, %v2160_v48, -inf  ;;  %v2174_v60 = vadd.f32 %v2160_v48, %v4620_v10 }
0x2010   :  { %2164 = vmax.xlane.f32.xlu0 %v2163_v57 }
0x209d   :  { %v2165_v58 = vpop.xlane.xlu0 %2164 }
0x209e   :  { %v2166_v59 = vsub.f32 %v2160_v48, %v2165_v58 }
0x20a0   :  { %v2167_v1 = vmul.f32 1.442695, %v2166_v59 }
0x20a2   :  { %4077 = vpow2.f32 %v2167_v1 }
0x20ac   :  { %v4078_v54 = vpop.eup %4077 }
0x20ad   :  { %v2169_v61 = vsel %vm499_vm4, %v4078_v54, 0.0 }
0x20ae   :  { %2170 = vadd.xlane.f32.xlu1 %v2169_v61 }
0x213b   :  { %v2171_v63 = vpop.xlane.xlu1 %2170 }
0x213c   :  { %4079 = vrcp.f32 %v2171_v63 }
0x2146   :  { %v4080_v40 = vpop.eup %4079 }
0x2147   :  { %v2173_v11 = vmul.f32 %v4080_v40, %v4078_v54 }
0x2149   :  { %v2175_v13 = vsel %vm499_vm4, %v2173_v11, %v2174_v60 }
0x214a   :  { %3061 = vst.msk [vmem:[%s4852_s11 + $0x20] sm:$0xff] %vm99_vm0, %v2175_v13  ;;  %v4699_v14 = vsel %vm2180_vm9, %v2175_v13, %v3062_v4  ;;  %v3071_v4 = vld [vmem:[%s4842_s0 + $0x30] sm:$0xff] }
0x214b   :  { %3618 = vmatmul.mubr.msk.f32.vlgmr.msra.gmra.mrb[24].mxu1 %vm99_vm0, %v4699_v14  ;;  %vm2596_vm10 = vcmp.ne.f32.partialorder %v3071_v4, %v3071_v4 }
0x214c   :  { %3939 = vmatpush3.bf16.msra.mxu1 %v4262_v25  ;;  %3647 = vmatprep.mubr.msk.f32.mxu1 %vm4120_vm1, %v4119_v0 }
0x214d   :  { %3940 = vmatprep.subr.bf16.mxu1 %v4121_v3 }
0x2150   :  { %3942 = vmatpush3.bf16.msra.mxu1 %v4272_v28 }
0x2151   :  { %3943 = vmatprep.subr.bf16.mxu1 %v4121_v3 }
0x221e   :  { %v2251_v10 = vpop.f32.mrb[24].mxu1 }
0x221f   :  { %v2252_v8 = vadd.f32 %v4712_v17, %v2251_v10  ;;  %v3619_v16 = vpop.f32.mrb[25].mxu1 }
0x2221   :  { %4081 = vtanh.f32 %v2252_v8 }
0x222b   :  { %v4082_v19 = vpop.eup %4081 }
0x222c   :  { %2257 = vrot.lane.b32.xlu0 %v4082_v19, %s4122_s3 }
0x229e   :  { %v2258_v20 = vpop.permute.xlu0 %2257 }
0x229f   :  { %v2260_v21 = vsel %vm178_vm2, %v4643_v34, %v2258_v20 }
0x22a0   :  { %3637 = vmatmul.mubr.msk.f32.vlgmr.msra.gmra.mrb[26].mxu0 %vm180_vm3, %v2260_v21 }
0x22a1   :  { %3957 = vmatpush3.bf16.msra.mxu0 %v4353_v62  ;;  %3677 = vmatprep.mubr.msk.f32.mxu0 %vm4120_vm1, %v4119_v0 }
0x22a2   :  { %3958 = vmatprep.subr.bf16.mxu0 %v4121_v3 }
0x22a5   :  { %3960 = vmatpush3.bf16.msra.mxu0 %v4363_v5 }
0x22a6   :  { %3680 = vmatprep.subr.mxu0 %v4119_v0 }
0x2373   :  { %v2330_v24 = vpop.f32.mrb[26].mxu0 }
0x2374   :  { %v2331_v18 = vadd.f32 %v4728_v26, %v2330_v24  ;;  %v3638_v30 = vpop.f32.mrb[27].mxu0 }
0x2376   :  { %v3065_v31 = vmul.f32 -1.442695, %v2331_v18 }
0x2378   :  { %4083 = vpow2.f32 %v3065_v31 }
0x2382   :  { %v4084_v32 = vpop.eup %4083 }
0x2383   :  { %v2337_v29 = vadd.f32 1.0, %v4084_v32 }
0x2385   :  { %4085 = vrcp.f32 %v2337_v29 }
0x238f   :  { %v4086_v27 = vpop.eup %4085 }
0x2390   :  { %v2341_v35 = vsub.f32 1.0, %v4086_v27  ;;  %v2340_v36 = vmul.f32 %v4086_v27, %v4643_v34 }
0x2392   :  { %v2342_v37 = vmul.f32 %v4082_v19, %v2341_v35 }
0x2394   :  { %v4732_v22 = vadd.f32 %v2342_v37, %v2340_v36 }
0x2396   :  { %3648 = vmatmul.mubr.msk.f32.vlgmr.msra.gmra.mrb[26].mxu1 %vm178_vm2, %v4732_v22 }
0x2397   :  { %3945 = vmatpush3.bf16.msra.mxu1 %v4297_v44  ;;  %3666 = vmatprep.mubr.msk.f32.mxu1 %vm4120_vm1, %v4119_v0 }
0x2398   :  { %3946 = vmatprep.subr.bf16.mxu1 %v4121_v3 }
0x239b   :  { %3948 = vmatpush3.bf16.msra.mxu1 %v4303_v46 }
0x239c   :  { %3949 = vmatprep.subr.bf16.mxu1 %v4121_v3 }
0x239f   :  { %3951 = vmatpush3.bf16.msra.mxu1 %v4313_v49 }
0x23a0   :  { %3952 = vmatprep.subr.bf16.mxu1 %v4121_v3 }
0x23a3   :  { %3954 = vmatpush3.bf16.msra.mxu1 %v4323_v52 }
0x23a4   :  { %3961 = vmatprep.subr.bf16.mxu1 %v4121_v3 }
0x2469   :  { %v2413_v34 = vpop.f32.mrb[26].mxu1 }
0x246a   :  { %v2414_v38 = vadd.f32 %v4749_v53, %v2413_v34  ;;  %v3649_v41 = vpop.f32.mrb[27].mxu1 }
0x246c   :  { %4087 = vtanh.f32 %v2414_v38 }
0x2476   :  { %v4088_v42 = vpop.eup %4087 }
0x2477   :  { %2419 = vrot.lane.b32.xlu1 %v4088_v42, %s4122_s3 }
0x24e9   :  { %v2420_v2 = vpop.permute.xlu1 %2419 }
0x24ea   :  { %v2422_v45 = vsel %vm178_vm2, %v4674_v43, %v2420_v2 }
0x24eb   :  { %3667 = vmatmul.mubr.msk.f32.vlgmr.msra.gmra.mrb[28].mxu1 %vm180_vm3, %v2422_v45  ;;  %v4118_v45 = vld [vmem:[%s4851_s10] ss:$0 sm:$0xff] }
0x24ec   :  { %3963 = vmatpush3.bf16.msra.mxu1 %v4214_v7  ;;  %3701 = vmatprep.mubr.msk.f32.mxu1 %vm4120_vm1, %v4119_v0 }
0x24ed   :  { %3964 = vmatprep.subr.bf16.mxu1 %v4121_v3 }
0x24f0   :  { %3966 = vmatpush3.bf16.msra.mxu1 %v4220_v9 }
0x24f1   :  { %3967 = vmatprep.subr.bf16.mxu1 %v4121_v3 }
0x24f4   :  { %3969 = vmatpush3.bf16.msra.mxu1 %v4230_v12 }
0x24f5   :  { %3970 = vmatprep.subr.bf16.mxu1 %v4121_v3 }
0x24f8   :  { %3972 = vmatpush3.bf16.msra.mxu1 %v4240_v15 }
0x24f9   :  { %3991 = vmatprep.subr.bf16.mxu1 %v4121_v3 }
0x25be   :  { %v2492_v33 = vpop.f32.mrb[28].mxu1 }
0x25bf   :  { %v2493_v7 = vadd.f32 %v4370_v6, %v2492_v33  ;;  %v3668_v47 = vpop.f32.mrb[29].mxu1 }
0x25c1   :  { %v3068_v50 = vmul.f32 -1.442695, %v2493_v7 }
0x25c3   :  { %4089 = vpow2.f32 %v3068_v50 }
0x25cd   :  { %v4090_v51 = vpop.eup %4089 }
0x25ce   :  { %v2499_v39 = vadd.f32 1.0, %v4090_v51 }
0x25d0   :  { %4091 = vrcp.f32 %v2499_v39 }
0x25da   :  { %v4092_v9 = vpop.eup %4091 }
0x25db   :  { %v2503_v48 = vsub.f32 1.0, %v4092_v9  ;;  %v2502_v56 = vmul.f32 %v4092_v9, %v4674_v43 }
0x25dd   :  { %v2504_v12 = vmul.f32 %v4088_v42, %v2503_v48 }
0x25df   :  { %v4768_v57 = vadd.f32 %v2504_v12, %v2502_v56 }
0x25e1   :  { %3678 = vmatmul.mubr.msk.f32.vlgmr.msra.gmra.mrb[28].mxu0 %vm178_vm2, %v4768_v57 }
0x25e2   :  { %3681 = vmatpush3.msra.mxu0 %v4681_v55  ;;  %3682 = vmatprep.mubr.msk.f32.mxu0 %vm4120_vm1, %v4119_v0 }
0x25e3   :  { %3973 = vmatprep.subr.bf16.mxu0 %v4121_v3 }
0x26b4   :  { %v2575_v15 = vpop.f32.mrb[28].mxu0 }
0x26b5   :  { %v2576_v6 = vadd.f32 %v4384_v23, %v2575_v15  ;;  %v3679_v58 = vpop.f32.mrb[29].mxu0 }
0x26b7   :  { %v2579_v59 = vsel %vm499_vm4, %v2576_v6, -inf  ;;  %v2590_v23 = vadd.f32 %v2576_v6, %v4699_v14 }
0x26b8   :  { %2580 = vmax.xlane.f32.xlu0 %v2579_v59 }
0x2745   :  { %v2581_v43 = vpop.xlane.xlu0 %2580 }
0x2746   :  { %v2582_v1 = vsub.f32 %v2576_v6, %v2581_v43 }
0x2748   :  { %v2583_v54 = vmul.f32 1.442695, %v2582_v1 }
0x274a   :  { %4093 = vpow2.f32 %v2583_v54 }
0x2754   :  { %v4094_v61 = vpop.eup %4093 }
0x2755   :  { %v2585_v63 = vsel %vm499_vm4, %v4094_v61, 0.0 }
0x2756   :  { %2586 = vadd.xlane.f32.xlu1 %v2585_v63 }
0x27e3   :  { %v2587_v55 = vpop.xlane.xlu1 %2586 }
0x27e4   :  { %4095 = vrcp.f32 %v2587_v55 }
0x27ee   :  { %v4096_v40 = vpop.eup %4095 }
0x27ef   :  { %v2589_v60 = vmul.f32 %v4096_v40, %v4094_v61 }
0x27f1   :  { %v2591_v11 = vsel %vm499_vm4, %v2589_v60, %v2590_v23 }
0x27f2   :  { %3070 = vst.msk [vmem:[%s4852_s11 + $0x28] sm:$0xff] %vm99_vm0, %v2591_v11  ;;  %v4788_v13 = vsel %vm2596_vm10, %v2591_v11, %v3071_v4 }
0x27f3   :  { %3683 = vmatmul.mubr.msk.f32.vlgmr.msra.gmra.mrb[30].mxu0 %vm99_vm0, %v4788_v13 }
0x27f4   :  { %3975 = vmatpush3.bf16.msra.mxu0 %v4262_v25  ;;  %3712 = vmatprep.mubr.msk.f32.mxu0 %vm4120_vm1, %v4119_v0 }
0x27f5   :  { %3976 = vmatprep.subr.bf16.mxu0 %v4121_v3 }
0x27f8   :  { %3978 = vmatpush3.bf16.msra.mxu0 %v4272_v28 }
0x27f9   :  { %3979 = vmatprep.subr.bf16.mxu0 %v4121_v3 }
0x28c6   :  { %v2667_v14 = vpop.f32.mrb[30].mxu0 }
0x28c7   :  { %v2668_v10 = vadd.f32 %v4712_v17, %v2667_v14  ;;  %v3684_v8 = vpop.f32.mrb[31].mxu0 }
0x28c9   :  { %4097 = vtanh.f32 %v2668_v10 }
0x28d3   :  { %v4098_v16 = vpop.eup %4097 }
0x28d4   :  { %2673 = vrot.lane.b32.xlu0 %v4098_v16, %s4122_s3 }
0x2946   :  { %v2674_v19 = vpop.permute.xlu0 %2673 }
0x2947   :  { %v2676_v25 = vsel %vm178_vm2, %v4732_v22, %v2674_v19 }
0x2948   :  { %3702 = vmatmul.mubr.msk.f32.vlgmr.msra.gmra.mrb[30].mxu1 %vm180_vm3, %v2676_v25 }
0x2949   :  { %3993 = vmatpush3.bf16.msra.mxu1 %v4353_v62  ;;  %3742 = vmatprep.mubr.msk.f32.mxu1 %vm4120_vm1, %v4119_v0 }
0x294a   :  { %3994 = vmatprep.subr.bf16.mxu1 %v4121_v3 }
0x294d   :  { %3996 = vmatpush3.bf16.msra.mxu1 %v4363_v5 }
0x2a1b   :  { %v2746_v28 = vpop.f32.mrb[30].mxu1 }
0x2a1c   :  { %v2747_v17 = vadd.f32 %v4728_v26, %v2746_v28  ;;  %v3703_v20 = vpop.f32.mrb[31].mxu1 }
0x2a1e   :  { %v3074_v21 = vmul.f32 -1.442695, %v2747_v17 }
0x2a20   :  { %4099 = vpow2.f32 %v3074_v21 }
0x2a2a   :  { %v4100_v24 = vpop.eup %4099 }
0x2a2b   :  { %v2753_v18 = vadd.f32 1.0, %v4100_v24 }
0x2a2d   :  { %4101 = vrcp.f32 %v2753_v18 }
0x2a37   :  { %v4102_v30 = vpop.eup %4101 }
0x2a38   :  { %v2757_v31 = vsub.f32 1.0, %v4102_v30  ;;  %v2756_v62 = vmul.f32 %v4102_v30, %v4732_v22 }
0x2a3a   :  { %v2758_v32 = vmul.f32 %v4098_v16, %v2757_v31 }
0x2a3c   :  { %v2759_v29 = vadd.f32 %v2758_v32, %v2756_v62 }
0x2a3e   :  { %3713 = vmatmul.mubr.msk.f32.vlgmr.msra.gmra.mrb[32].mxu0 %vm178_vm2, %v2759_v29 }
0x2a3f   :  { %3981 = vmatpush3.bf16.msra.mxu0 %v4297_v44  ;;  %3731 = vmatprep.mubr.msk.f32.mxu0 %vm4120_vm1, %v4119_v0 }
0x2a40   :  { %3982 = vmatprep.subr.bf16.mxu0 %v4121_v3 }
0x2a43   :  { %3984 = vmatpush3.bf16.msra.mxu0 %v4303_v46 }
0x2a44   :  { %3985 = vmatprep.subr.bf16.mxu0 %v4121_v3 }
0x2a47   :  { %3987 = vmatpush3.bf16.msra.mxu0 %v4313_v49 }
0x2a48   :  { %3988 = vmatprep.subr.bf16.mxu0 %v4121_v3  ;;  %v4117_v3 = vld [vmem:[%s4850_s8] ss:$0 sm:$0xff] }
0x2a4b   :  { %3990 = vmatpush3.bf16.msra.mxu0 %v4323_v52 }
0x2b11   :  { %v2829_v5 = vpop.f32.mrb[32].mxu0 }
0x2b12   :  { %v2830_v26 = vadd.f32 %v4749_v53, %v2829_v5  ;;  %v3714_v27 = vpop.f32.mrb[33].mxu0 }
0x2b14   :  { %4103 = vtanh.f32 %v2830_v26 }
0x2b1e   :  { %v4104_v44 = vpop.eup %4103 }
0x2b1f   :  { %2835 = vrot.lane.b32.xlu1 %v4104_v44, %s4122_s3 }
0x2b91   :  { %v2836_v0 = vpop.permute.xlu1 %2835 }
0x2b92   :  { %v2838_v46 = vsel %vm178_vm2, %v4768_v57, %v2836_v0 }
0x2b93   :  { %3732 = vmatmul.mubr.msk.f32.vlgmr.msra.gmra.mrb[34].mxu0 %vm180_vm3, %v2838_v46 }
0x2c66   :  { %v2908_v35 = vpop.f32.mrb[34].mxu0 }
0x2c67   :  { %v2909_v49 = vadd.f32 %v4117_v3, %v2908_v35  ;;  %v3733_v52 = vpop.f32.mrb[35].mxu0 }
0x2c69   :  { %v3077_v36 = vmul.f32 -1.442695, %v2909_v49 }
0x2c6b   :  { %4105 = vpow2.f32 %v3077_v36 }
0x2c75   :  { %v4106_v37 = vpop.eup %4105 }
0x2c76   :  { %v2915_v22 = vadd.f32 1.0, %v4106_v37 }
0x2c78   :  { %4107 = vrcp.f32 %v2915_v22 }
0x2c82   :  { %v4108_v34 = vpop.eup %4107 }
0x2c83   :  { %v2919_v53 = vsub.f32 1.0, %v4108_v34  ;;  %v2918_v38 = vmul.f32 %v4108_v34, %v4768_v57 }
0x2c85   :  { %v2920_v41 = vmul.f32 %v4104_v44, %v2919_v53 }
0x2c87   :  { %v2921_v42 = vadd.f32 %v2920_v41, %v2918_v38 }
0x2c89   :  { %3743 = vmatmul.mubr.msk.f32.vlgmr.msra.gmra.mrb[32].mxu1 %vm178_vm2, %v2921_v42 }
0x2d5c   :  { %v2991_v2 = vpop.f32.mrb[32].mxu1 }
0x2d5d   :  { %v2992_v33 = vadd.f32 %v4118_v45, %v2991_v2  ;;  %v3744_v7 = vpop.f32.mrb[33].mxu1 }
0x2d5f   :  { %v2995_v47 = vsel %vm499_vm4, %v2992_v33, -inf  ;;  %v3006_v57 = vadd.f32 %v2992_v33, %v4788_v13 }
0x2d60   :  { %2996 = vmax.xlane.f32.xlu0 %v2995_v47 }
0x2ded   :  { %v2997_v50 = vpop.xlane.xlu0 %2996 }
0x2dee   :  { %v2998_v51 = vsub.f32 %v2992_v33, %v2997_v50 }
0x2df0   :  { %v2999_v39 = vmul.f32 1.442695, %v2998_v51 }
0x2df2   :  { %4109 = vpow2.f32 %v2999_v39 }
0x2dfc   :  { %v4110_v9 = vpop.eup %4109 }
0x2dfd   :  { %v3001_v48 = vsel %vm499_vm4, %v4110_v9, 0.0 }
0x2dfe   :  { %3002 = vadd.xlane.f32.xlu1 %v3001_v48 }
0x2e8b   :  { %v3003_v56 = vpop.xlane.xlu1 %3002 }
0x2e8c   :  { %4111 = vrcp.f32 %v3003_v56 }
0x2e96   :  { %v4112_v12 = vpop.eup %4111 }
0x2e97   :  { %v3005_v15 = vmul.f32 %v4112_v12, %v4110_v9 }
0x2e99   :  { %v3007_v6 = vsel %vm499_vm4, %v3005_v15, %v3006_v57 }
0x2e9a   :  { %3079 = vst.msk [vmem:[%s4852_s11 + $0x30] sm:$0xff] %vm99_vm0, %v3007_v6 }

</bundles_post_ra>
